<compile_context>
chip_gen: v7x
topology: tpu7x:2x2x1
jax: 0.10.0
libtpu: 0.0.40
codegen_flags: <defaults>
</compile_context>

<pallas_src>
import functools

import jax
import jax.numpy as jnp
from jax.experimental import pallas as pl
from jax.experimental.pallas import tpu as pltpu


LANE = 128


def _round_up(x, m):
    return ((x + m - 1) // m) * m


def _pick_tile(m, t_max):
    """Tile along a 'parallel' grid axis: <= t_max, multiple of 8, and split
    into >= 2 blocks whenever possible so v7x's two TensorCores both get work."""
    t = min(t_max, _round_up(m, 8))
    if pl.cdiv(m, t) == 1 and m > 8:
        t = _round_up(pl.cdiv(m, 2), 8)
    return t


# ---------------------------------------------------------------------------
# Pallas kernels
# ---------------------------------------------------------------------------

def _matmul_bias_kernel(a_ref, b_ref, bias_ref, o_ref, *, apply_relu):
    """One M-tile of out = relu?(A @ B + bias).  A:[tm,K]  B:[K,Np]  bias:[1,Np].

    B is pre-cast (bf16 when enabled); A is cast to B's dtype (no-op when it
    already matches); accumulation is f32 on the MXU; bias stays f32.
    """
    a = a_ref[...]
    b = b_ref[...]
    acc = jnp.dot(a.astype(b.dtype), b, preferred_element_type=jnp.float32)
    acc = acc + bias_ref[...]
    if apply_relu:
        acc = jnp.maximum(acc, 0.0)
    o_ref[...] = acc


def matmul_bias(a, b, bias, *, relu=False, tm=512):
    """Pallas matmul with fused bias / ReLU, tiled over M.

    `b` / `bias` are pre-padded to a multiple of 128 output columns so stores
    are lane-dense (full `vst`).  M is padded to a multiple of the tile so the
    ragged edge-block path is never exercised; the pad rows are sliced off.
    """
    M, K = a.shape
    Kb, Np = b.shape
    assert Kb == K and Np % LANE == 0
    tm = _pick_tile(M, tm)
    Mp = _round_up(M, tm)
    if Mp != M:
        a = jnp.pad(a, ((0, Mp - M), (0, 0)))

    out = pl.pallas_call(
        functools.partial(_matmul_bias_kernel, apply_relu=relu),
        out_shape=jax.ShapeDtypeStruct((Mp, Np), jnp.float32),
        grid=(Mp // tm,),
        in_specs=[
            pl.BlockSpec((tm, K), lambda i: (i, 0)),
            pl.BlockSpec((K, Np), lambda i: (0, 0)),
            pl.BlockSpec((1, Np), lambda i: (0, 0)),
        ],
        out_specs=pl.BlockSpec((tm, Np), lambda i: (i, 0)),
        compiler_params=pltpu.CompilerParams(dimension_semantics=("parallel",)),
    )(a, b, bias)
    return out[:M] if Mp != M else out


def _vq_kernel(z_ref, et_ref, e_ref, e2_ref, q_ref, ids_ref):
    """One N-tile of vector quantization.

    z:[tn,D] latents (f32), et:[D,K] pre-transposed codebook (bf16/f32),
    e:[K,D] codebook (f32), e2:[1,K] precomputed ||e||^2
    -> q:[tn,D] nearest codebook rows (exact f32 rows), ids:[tn,1] int32
    (first-argmin tie-break).  ||z||^2 is dropped from the distance: constant
    per row, argmin-invariant.  Pre-transposed et avoids an in-kernel XLU
    transpose; the lane-axis min reductions keep the XLU slot.
    """
    z = z_ref[...]
    et = et_ref[...]
    e = e_ref[...]
    k = e.shape[0]

    ze = jnp.dot(z.astype(et.dtype), et, preferred_element_type=jnp.float32)  # [tn,K]
    dist = e2_ref[...] - 2.0 * ze                                             # [tn,K]
    dmin = jnp.min(dist, axis=1, keepdims=True)                               # [tn,1]
    iota = jax.lax.broadcasted_iota(jnp.int32, dist.shape, 1)                 # [tn,K]
    cand = jnp.where(dist <= dmin, iota, jnp.int32(k))
    ids = jnp.min(cand, axis=1, keepdims=True)                                # first argmin

    onehot = (iota == ids).astype(jnp.float32)                                # [tn,K]
    q_ref[...] = jnp.dot(onehot, e, preferred_element_type=jnp.float32)
    ids_ref[...] = ids
    # TODO(synk): emit ids lane-dense ([1, tn]) to avoid the narrow masked
    # store once N grows; negligible bytes at current sizes.


def vector_quantize(z_flat, codebook, codebook_t, e2_row, *, tn=128):
    """Tiled VQ: nearest codebook rows, indices, and mean squared error."""
    N, D = z_flat.shape
    K = codebook.shape[0]
    tn = _pick_tile(N, tn)
    Np = _round_up(N, tn)
    z_p = jnp.pad(z_flat, ((0, Np - N), (0, 0))) if Np != N else z_flat

    q_p, ids_p = pl.pallas_call(
        _vq_kernel,
        out_shape=(
            jax.ShapeDtypeStruct((Np, D), jnp.float32),
            jax.ShapeDtypeStruct((Np, 1), jnp.int32),
        ),
        grid=(Np // tn,),
        in_specs=[
            pl.BlockSpec((tn, D), lambda j: (j, 0)),
            pl.BlockSpec((D, K), lambda j: (0, 0)),
            pl.BlockSpec((K, D), lambda j: (0, 0)),
            pl.BlockSpec((1, K), lambda j: (0, 0)),
        ],
        out_specs=(
            pl.BlockSpec((tn, D), lambda j: (j, 0)),
            pl.BlockSpec((tn, 1), lambda j: (j, 0)),
        ),
        compiler_params=pltpu.CompilerParams(dimension_semantics=("parallel",)),
    )(z_p, codebook_t, codebook, e2_row)

    q = q_p[:N]
    ids = ids_p[:N, 0]
    # MSE reduced outside the kernel: keeps the N-grid axis order-independent
    # ("parallel" / megacore-safe) and the n*d normalization exact for any N.
    mse = jnp.mean(jnp.square(q - z_flat))
    return q, ids, mse


# ---------------------------------------------------------------------------
# Conv / conv-transpose built on the Pallas matmul (NHWC glue in plain JAX)
# ---------------------------------------------------------------------------

def _im2col_nhwc(x, k, stride, pad):
    """x:[B,H,W,C] -> patches [B*Ho*Wo, k*k*C] (tap-major, channel-minor)."""
    B, H, W, C = x.shape
    xp = jnp.pad(x, ((0, 0), (pad, pad), (pad, pad), (0, 0)))
    Ho = (H + 2 * pad - k) // stride + 1
    Wo = (W + 2 * pad - k) // stride + 1
    taps = [
        xp[:, dy:dy + (Ho - 1) * stride + 1:stride,
              dx:dx + (Wo - 1) * stride + 1:stride, :]
        for dy in range(k) for dx in range(k)
    ]
    col = jnp.concatenate(taps, axis=-1)            # [B, Ho, Wo, k*k*C]
    # TODO(synk): fold this gather into the Pallas kernel (per-tap accumulation
    # over a VMEM-resident activation tile + halo) to avoid materializing the
    # k*k-replicated patch matrix in HBM.
    return col.reshape(B * Ho * Wo, k * k * C), Ho, Wo


def conv2d_nhwc(x, w2_p, bias_p, *, cout, k, stride, pad, relu=False, tm=512):
    """PyTorch Conv2d semantics on NHWC input via im2col + Pallas matmul."""
    B = x.shape[0]
    col, Ho, Wo = _im2col_nhwc(x.astype(w2_p.dtype), k, stride, pad)
    out = matmul_bias(col, w2_p, bias_p, relu=relu, tm=tm)[:, :cout]
    return out.reshape(B, Ho, Wo, cout)


def conv_transpose2d_s2_nhwc(x, wc_p, bias_p, *, cout, relu=False, tm=512):
    """ConvTranspose2d(k=4, stride=2, pad=1) on NHWC input via the sub-pixel
    (phase-packed) decomposition: one stride-1 3x3 im2col + one matmul producing
    all 4 output phases, then interleave to [B, 2H, 2W, Cout]."""
    B, H, W, _ = x.shape
    col, _, _ = _im2col_nhwc(x.astype(wc_p.dtype), 3, 1, 1)
    out = matmul_bias(col, wc_p, bias_p, relu=relu, tm=tm)[:, :4 * cout]
    out = out.reshape(B, H, W, 2, 2, cout)           # [..., py, px, co]
    out = out.transpose(0, 1, 3, 2, 4, 5).reshape(B, 2 * H, 2 * W, cout)
    return out


# ---------------------------------------------------------------------------
# Parameters
# ---------------------------------------------------------------------------

def init_params(key, in_ch=3, hidden=32, embed_dim=16, n_e=128):
    keys = jax.random.split(key, 5)
    s = 0.1
    params = {
        "enc_w1": jax.random.normal(keys[0], (hidden, in_ch, 4, 4)) * s,      # Conv2d [Cout,Cin,k,k]
        "enc_b1": jnp.zeros((hidden,)),
        "enc_w2": jax.random.normal(keys[1], (embed_dim, hidden, 4, 4)) * s,
        "enc_b2": jnp.zeros((embed_dim,)),
        "codebook": jax.random.normal(keys[2], (n_e, embed_dim)) * s,
        "dec_w1": jax.random.normal(keys[3], (embed_dim, hidden, 4, 4)) * s,  # ConvTranspose2d [Cin,Cout,k,k]
        "dec_b1": jnp.zeros((hidden,)),
        "dec_w2": jax.random.normal(keys[4], (hidden, in_ch, 4, 4)) * s,
        "dec_b2": jnp.zeros((in_ch,)),
    }
    return jax.tree.map(lambda t: t.astype(jnp.float32), params)


def _pad_cols(w2, bias):
    """Pad matmul weights / bias to a multiple of 128 output columns (lane-dense)."""
    K, N = w2.shape
    Np = _round_up(N, LANE)
    return (jnp.pad(w2, ((0, 0), (0, Np - N))),
            jnp.pad(bias.reshape(1, N), ((0, 0), (0, Np - N))))


def _conv_weight_matrix(w):
    """Conv2d weight [Cout,Cin,k,k] -> [(kh*k+kw)*Cin+ci, Cout] (matches _im2col_nhwc)."""
    cout, cin, k, _ = w.shape
    return w.transpose(2, 3, 1, 0).reshape(k * k * cin, cout)


def _deconv_phase_matrix(w, b):
    """ConvTranspose2d(k=4,s=2,p=1) weight [Cin,Cout,4,4] -> phase-packed matrix.

    Rows match a stride-1 3x3 im2col (dy,dx in {0,1,2} = input offsets {-1,0,+1});
    columns are [phase(py,px), Cout].  Exact identity used:
      out[2m+py, 2n+px, co] = b[co]
        + sum_{t,u in {0,1}} x[m+t+py-1, n+u+px-1, :] . w[:, co, 3-py-2t, 3-px-2u]
    """
    cin, cout, k, _ = w.shape
    assert k == 4
    wc = jnp.zeros((9 * cin, 4 * cout), w.dtype)
    for py in range(2):
        for px in range(2):
            ph = py * 2 + px
            for t in range(2):
                for u in range(2):
                    dy, dx = t + py, u + px
                    kh, kw = 3 - py - 2 * t, 3 - px - 2 * u
                    r0 = (dy * 3 + dx) * cin
                    wc = wc.at[r0:r0 + cin, ph * cout:(ph + 1) * cout].set(w[:, :, kh, kw])
    bc = jnp.concatenate([b] * 4)
    return wc, bc


def prepare_params(params, *, use_bf16=True):
    """One-time packing of weights into padded, lane-dense matmul matrices."""
    cdt = jnp.bfloat16 if use_bf16 else jnp.float32
    hidden, in_ch = params["enc_w1"].shape[0], params["enc_w1"].shape[1]
    embed_dim = params["enc_w2"].shape[0]
    n_e = params["codebook"].shape[0]

    w1p, b1p = _pad_cols(_conv_weight_matrix(params["enc_w1"]), params["enc_b1"])
    w2p, b2p = _pad_cols(_conv_weight_matrix(params["enc_w2"]), params["enc_b2"])
    wc1, bc1 = _deconv_phase_matrix(params["dec_w1"], params["dec_b1"])
    wc1p, bc1p = _pad_cols(wc1, bc1)
    wc2, bc2 = _deconv_phase_matrix(params["dec_w2"], params["dec_b2"])
    wc2p, bc2p = _pad_cols(wc2, bc2)
    codebook = params["codebook"]
    e2 = jnp.sum(codebook * codebook, axis=1, keepdims=True).T       # [1, K]

    mats = {
        "enc_w1": w1p.astype(cdt), "enc_b1": b1p,
        "enc_w2": w2p.astype(cdt), "enc_b2": b2p,
        "dec_w1": wc1p.astype(cdt), "dec_b1": bc1p,
        "dec_w2": wc2p.astype(cdt), "dec_b2": bc2p,
        "codebook": codebook,                        # f32 [K, D] (exact q rows)
        "codebook_t": codebook.T.astype(cdt),        # [D, K] for the distance matmul
        "e2": e2,
    }
    dims = {"in_ch": in_ch, "hidden": hidden, "embed_dim": embed_dim, "n_e": n_e}
    return mats, dims


# ---------------------------------------------------------------------------
# VQVAE forward (Pallas path)
# ---------------------------------------------------------------------------

def vqvae_forward(mats, images, *, dims, beta=0.25, tm=512):
    """Forward pass matching the PyTorch VQVAE module (NCHW in / NCHW out)."""
    x = jnp.transpose(images, (0, 2, 3, 1))          # NCHW -> NHWC once

    # --- encoder: two strided convs (k=4, s=2, p=1), ReLU between ---
    h = conv2d_nhwc(x, mats["enc_w1"], mats["enc_b1"], cout=dims["hidden"],
                    k=4, stride=2, pad=1, relu=True, tm=tm)
    z = conv2d_nhwc(h, mats["enc_w2"], mats["enc_b2"], cout=dims["embed_dim"],
                    k=4, stride=2, pad=1, relu=False, tm=tm)          # [B,h,w,D]

    # --- vector quantizer ---
    B, Hl, Wl, D = z.shape
    z_flat = z.reshape(B * Hl * Wl, D)
    q_flat, ids_flat, mse = vector_quantize(z_flat, mats["codebook"],
                                            mats["codebook_t"], mats["e2"])
    # codebook loss + beta * commitment loss (identical values in the forward pass)
    vq_loss = mse + beta * mse
    q = q_flat.reshape(B, Hl, Wl, D)
    ids = ids_flat.reshape(B, Hl, Wl)
    # straight-through estimator: forward value of (z + sg(q - z)) == q
    # TODO(synk): sg()/gradient structure is not implemented (forward-only kernels).

    # --- decoder: two transposed convs (k=4, s=2, p=1), ReLU between ---
    d = conv_transpose2d_s2_nhwc(q, mats["dec_w1"], mats["dec_b1"],
                                 cout=dims["hidden"], relu=True, tm=tm)
    recon = conv_transpose2d_s2_nhwc(d, mats["dec_w2"], mats["dec_b2"],
                                     cout=dims["in_ch"], relu=False, tm=tm)

    return {
        "images": images,
        "reconstructed_images": jnp.transpose(recon, (0, 3, 1, 2)),
        "vq_loss": vq_loss,
        "latents": jnp.transpose(z, (0, 3, 1, 2)),
        "quantized_latents": jnp.transpose(q, (0, 3, 1, 2)),
        "quantized_latents_ids": ids,
    }


# ---------------------------------------------------------------------------
# Pure-JAX (XLA) reference, used only to validate the Pallas f32 path
# ---------------------------------------------------------------------------

def _ref_conv(x, w, b, stride, pad):
    """x NHWC, w [Cout,Cin,kh,kw] -> PyTorch Conv2d."""
    out = jax.lax.conv_general_dilated(
        x, jnp.transpose(w, (2, 3, 1, 0)), window_strides=(stride, stride),
        padding=((pad, pad), (pad, pad)),
        dimension_numbers=("NHWC", "HWIO", "NHWC"))
    return out + b.reshape(1, 1, 1, -1)


def _ref_deconv(x, w, b):
    """x NHWC, w [Cin,Cout,kh,kw] -> PyTorch ConvTranspose2d(k=4,s=2,p=1)."""
    wf = jnp.transpose(w, (2, 3, 0, 1))[::-1, ::-1, :, :]   # flipped, HWIO
    out = jax.lax.conv_general_dilated(
        x, wf, window_strides=(1, 1), padding=((2, 2), (2, 2)),
        lhs_dilation=(2, 2), dimension_numbers=("NHWC", "HWIO", "NHWC"))
    return out + b.reshape(1, 1, 1, -1)


def vqvae_reference(params, images, beta=0.25):
    x = jnp.transpose(images, (0, 2, 3, 1))
    h = jax.nn.relu(_ref_conv(x, params["enc_w1"], params["enc_b1"], 2, 1))
    z = _ref_conv(h, params["enc_w2"], params["enc_b2"], 2, 1)
    B, Hl, Wl, D = z.shape
    zf = z.reshape(-1, D)
    e = params["codebook"]
    dist = jnp.sum(e * e, axis=1)[None, :] - 2.0 * (zf @ e.T)
    ids = jnp.argmin(dist, axis=1)
    qf = e[ids]
    mse = jnp.mean(jnp.square(qf - zf))
    q = qf.reshape(B, Hl, Wl, D)
    d = jax.nn.relu(_ref_deconv(q, params["dec_w1"], params["dec_b1"]))
    recon = _ref_deconv(d, params["dec_w2"], params["dec_b2"])
    return {
        "reconstructed_images": jnp.transpose(recon, (0, 3, 1, 2)),
        "vq_loss": (1.0 + beta) * mse,
        "latents": jnp.transpose(z, (0, 3, 1, 2)),
        "quantized_latents": jnp.transpose(q, (0, 3, 1, 2)),
        "quantized_latents_ids": ids.reshape(B, Hl, Wl).astype(jnp.int32),
    }


if __name__ == "__main__":
    key = jax.random.PRNGKey(0)
    pkey, xkey = jax.random.split(key)
    params = init_params(pkey)
    images = jax.random.normal(xkey, (2, 3, 16, 16), dtype=jnp.float32)

    # --- correctness: f32 Pallas path vs pure-JAX/XLA reference ---
    mats_f32, dims = prepare_params(params, use_bf16=False)
    fwd_f32 = jax.jit(functools.partial(vqvae_forward, dims=dims))
    got = fwd_f32(mats_f32, images)
    ref = jax.jit(vqvae_reference)(params, images)
    jax.block_until_ready((got, ref))
    for name in ("latents", "quantized_latents", "reconstructed_images"):
        err = float(jnp.max(jnp.abs(got[name] - ref[name])))
        assert err <= 5e-3, f"{name} mismatch vs reference: max abs err {err}"
    assert abs(float(got["vq_loss"]) - float(ref["vq_loss"])) <= 5e-3

    # --- main run: bf16 MXU operands, f32 accumulation ---
    mats, dims = prepare_params(params, use_bf16=True)
    fwd = jax.jit(functools.partial(vqvae_forward, dims=dims))
    out = fwd(mats, images)
    jax.block_until_ready(out)

    assert out["reconstructed_images"].shape == (2, 3, 16, 16)
    assert out["latents"].shape == (2, 16, 4, 4)
    assert out["quantized_latents"].shape == (2, 16, 4, 4)
    assert out["quantized_latents_ids"].shape == (2, 4, 4)
    assert out["quantized_latents_ids"].dtype == jnp.int32
    assert out["vq_loss"].shape == ()
    assert int(out["quantized_latents_ids"].max()) < dims["n_e"]
    assert bool(jnp.isfinite(out["reconstructed_images"]).all())

    print("KERNEL_OK")
</pallas_src>

<mosaic_0001>
module attributes {stable_mosaic.version = 11 : i64} {
  func.func @_vq_kernel(%arg0: i32, %arg1: memref<16x16xf32, #tpu.memory_space<vmem>>, %arg2: memref<16x128xf32, #tpu.memory_space<vmem>>, %arg3: memref<128x16xf32, #tpu.memory_space<vmem>>, %arg4: memref<1x128xf32, #tpu.memory_space<vmem>>, %arg5: memref<16x16xf32, #tpu.memory_space<vmem>>, %arg6: memref<16x1xi32, #tpu.memory_space<vmem>>) attributes {dimension_semantics = [#tpu.dimension_semantics<parallel>], iteration_bounds = array<i64: 2>, scalar_prefetch = 0 : i64, scratch_operands = 0 : i64, tpu.core_type = #tpu.core_type<tc>, window_params = [{transform_indices = @transform_0, window_bounds = array<i64: 16, 16>}, {pipeline_mode = #tpu.pipeline_mode<synchronous>, transform_indices = @transform_1, window_bounds = array<i64: 16, 128>}, {pipeline_mode = #tpu.pipeline_mode<synchronous>, transform_indices = @transform_2, window_bounds = array<i64: 128, 16>}, {pipeline_mode = #tpu.pipeline_mode<synchronous>, transform_indices = @transform_3, window_bounds = array<i64: 1, 128>}, {transform_indices = @transform_4, window_bounds = array<i64: 16, 16>}, {transform_indices = @transform_5, window_bounds = array<i64: 16, 1>}]} {
    %c0 = arith.constant 0 : index
    %c0_0 = arith.constant 0 : index
    %0 = vector.load %arg1[%c0, %c0_0] : memref<16x16xf32, #tpu.memory_space<vmem>>, vector<16x16xf32>
    %c0_1 = arith.constant 0 : index
    %c0_2 = arith.constant 0 : index
    %1 = vector.load %arg2[%c0_1, %c0_2] : memref<16x128xf32, #tpu.memory_space<vmem>>, vector<16x128xf32>
    %c0_3 = arith.constant 0 : index
    %c0_4 = arith.constant 0 : index
    %2 = vector.load %arg3[%c0_3, %c0_4] : memref<128x16xf32, #tpu.memory_space<vmem>>, vector<128x16xf32>
    %cst = arith.constant dense<0.000000e+00> : vector<16x128xf32>
    %3 = tpu.matmul %0, %1, %cst {dimension_numbers = #tpu.dot_dimension_numbers<[1], [0], [0], [1], [0, 0, 1, 1], [], []>} : vector<16x16xf32>, vector<16x128xf32>, vector<16x128xf32> -> vector<16x128xf32>
    %c0_5 = arith.constant 0 : index
    %c0_6 = arith.constant 0 : index
    %4 = vector.load %arg4[%c0_5, %c0_6] : memref<1x128xf32, #tpu.memory_space<vmem>>, vector<1x128xf32>
    %cst_7 = arith.constant 2.000000e+00 : f32
    %5 = vector.broadcast %cst_7 : f32 to vector<16x128xf32>
    %6 = arith.mulf %5, %3 : vector<16x128xf32>
    %7 = vector.broadcast %4 : vector<1x128xf32> to vector<16x128xf32>
    %8 = arith.subf %7, %6 : vector<16x128xf32>
    %cst_8 = arith.constant dense<0x7F800000> : vector<16xf32>
    %9 = vector.multi_reduction <minimumf>, %8, %cst_8 [1] : vector<16x128xf32> to vector<16xf32>
    %10 = vector.shape_cast %9 : vector<16xf32> to vector<16x1xf32>
    %11 = tpu.iota {dimensions = array<i32: 1>} : vector<16x128xi32>
    %12 = vector.broadcast %10 : vector<16x1xf32> to vector<16x128xf32>
    %13 = arith.cmpf ole, %8, %12 : vector<16x128xf32>
    %c128_i32 = arith.constant 128 : i32
    %14 = vector.broadcast %c128_i32 : i32 to vector<16x128xi32>
    %15 = arith.select %13, %11, %14 : vector<16x128xi1>, vector<16x128xi32>
    %cst_9 = arith.constant dense<2147483647> : vector<16xi32>
    %16 = vector.multi_reduction <minsi>, %15, %cst_9 [1] : vector<16x128xi32> to vector<16xi32>
    %17 = vector.shape_cast %16 : vector<16xi32> to vector<16x1xi32>
    %18 = vector.broadcast %17 : vector<16x1xi32> to vector<16x128xi32>
    %19 = arith.cmpi eq, %11, %18 : vector<16x128xi32>
    %20 = arith.extui %19 : vector<16x128xi1> to vector<16x128xi32>
    %21 = arith.sitofp %20 : vector<16x128xi32> to vector<16x128xf32>
    %cst_10 = arith.constant dense<0.000000e+00> : vector<16x16xf32>
    %22 = tpu.matmul %21, %2, %cst_10 {dimension_numbers = #tpu.dot_dimension_numbers<[1], [0], [0], [1], [0, 0, 1, 1], [], []>} : vector<16x128xf32>, vector<128x16xf32>, vector<16x16xf32> -> vector<16x16xf32>
    %c0_11 = arith.constant 0 : index
    %c0_12 = arith.constant 0 : index
    %23 = vector.load %arg5[%c0_11, %c0_12] : memref<16x16xf32, #tpu.memory_space<vmem>>, vector<16x16xf32>
    tpu.vector_store %arg5[%c0_11, %c0_12], %22 {strides = array<i32>} : memref<16x16xf32, #tpu.memory_space<vmem>>, vector<16x16xf32>,
    %c0_13 = arith.constant 0 : index
    %c0_14 = arith.constant 0 : index
    %24 = vector.load %arg6[%c0_13, %c0_14] : memref<16x1xi32, #tpu.memory_space<vmem>>, vector<16x1xi32>
    tpu.vector_store %arg6[%c0_13, %c0_14], %17 {strides = array<i32>} : memref<16x1xi32, #tpu.memory_space<vmem>>, vector<16x1xi32>,
    return
  }
  func.func @transform_0(%arg0: i32) -> (i32, i32) {
    %c0_i32 = arith.constant 0 : i32
    %c0_i32_0 = arith.constant 0 : i32
    return %arg0, %c0_i32 : i32, i32
  }
  func.func @transform_1(%arg0: i32) -> (i32, i32) {
    %c0_i32 = arith.constant 0 : i32
    %c0_i32_0 = arith.constant 0 : i32
    %c0_i32_1 = arith.constant 0 : i32
    return %c0_i32, %c0_i32_0 : i32, i32
  }
  func.func @transform_2(%arg0: i32) -> (i32, i32) {
    %c0_i32 = arith.constant 0 : i32
    %c0_i32_0 = arith.constant 0 : i32
    %c0_i32_1 = arith.constant 0 : i32
    return %c0_i32, %c0_i32_0 : i32, i32
  }
  func.func @transform_3(%arg0: i32) -> (i32, i32) {
    %c0_i32 = arith.constant 0 : i32
    %c0_i32_0 = arith.constant 0 : i32
    %c0_i32_1 = arith.constant 0 : i32
    return %c0_i32, %c0_i32_0 : i32, i32
  }
  func.func @transform_4(%arg0: i32) -> (i32, i32) {
    %c0_i32 = arith.constant 0 : i32
    %c0_i32_0 = arith.constant 0 : i32
    return %arg0, %c0_i32 : i32, i32
  }
  func.func @transform_5(%arg0: i32) -> (i32, i32) {
    %c0_i32 = arith.constant 0 : i32
    %c0_i32_0 = arith.constant 0 : i32
    return %arg0, %c0_i32 : i32, i32
  }
}

module attributes {stable_mosaic.version = 11 : i64} {
  func.func @_matmul_bias_kernel(%arg0: i32, %arg1: memref<64x48xf32, #tpu.memory_space<vmem>>, %arg2: memref<48x128xf32, #tpu.memory_space<vmem>>, %arg3: memref<1x128xf32, #tpu.memory_space<vmem>>, %arg4: memref<64x128xf32, #tpu.memory_space<vmem>>) attributes {dimension_semantics = [#tpu.dimension_semantics<parallel>], iteration_bounds = array<i64: 2>, scalar_prefetch = 0 : i64, scratch_operands = 0 : i64, tpu.core_type = #tpu.core_type<tc>, window_params = [{transform_indices = @transform_0, window_bounds = array<i64: 64, 48>}, {pipeline_mode = #tpu.pipeline_mode<synchronous>, transform_indices = @transform_1, window_bounds = array<i64: 48, 128>}, {pipeline_mode = #tpu.pipeline_mode<synchronous>, transform_indices = @transform_2, window_bounds = array<i64: 1, 128>}, {transform_indices = @transform_3, window_bounds = array<i64: 64, 128>}]} {
    %c0 = arith.constant 0 : index
    %c0_0 = arith.constant 0 : index
    %0 = vector.load %arg1[%c0, %c0_0] : memref<64x48xf32, #tpu.memory_space<vmem>>, vector<64x48xf32>
    %c0_1 = arith.constant 0 : index
    %c0_2 = arith.constant 0 : index
    %1 = vector.load %arg2[%c0_1, %c0_2] : memref<48x128xf32, #tpu.memory_space<vmem>>, vector<48x128xf32>
    %cst = arith.constant dense<0.000000e+00> : vector<64x128xf32>
    %2 = tpu.matmul %0, %1, %cst {dimension_numbers = #tpu.dot_dimension_numbers<[1], [0], [0], [1], [0, 0, 1, 1], [], []>} : vector<64x48xf32>, vector<48x128xf32>, vector<64x128xf32> -> vector<64x128xf32>
    %c0_3 = arith.constant 0 : index
    %c0_4 = arith.constant 0 : index
    %3 = vector.load %arg3[%c0_3, %c0_4] : memref<1x128xf32, #tpu.memory_space<vmem>>, vector<1x128xf32>
    %4 = vector.broadcast %3 : vector<1x128xf32> to vector<64x128xf32>
    %5 = arith.addf %2, %4 : vector<64x128xf32>
    %cst_5 = arith.constant 0.000000e+00 : f32
    %6 = vector.broadcast %cst_5 : f32 to vector<64x128xf32>
    %7 = arith.maximumf %5, %6 : vector<64x128xf32>
    %c0_6 = arith.constant 0 : index
    %c0_7 = arith.constant 0 : index
    %8 = vector.load %arg4[%c0_6, %c0_7] : memref<64x128xf32, #tpu.memory_space<vmem>>, vector<64x128xf32>
    tpu.vector_store %arg4[%c0_6, %c0_7], %7 {strides = array<i32>} : memref<64x128xf32, #tpu.memory_space<vmem>>, vector<64x128xf32>,
    return
  }
  func.func @transform_0(%arg0: i32) -> (i32, i32) {
    %c0_i32 = arith.constant 0 : i32
    %c0_i32_0 = arith.constant 0 : i32
    return %arg0, %c0_i32 : i32, i32
  }
  func.func @transform_1(%arg0: i32) -> (i32, i32) {
    %c0_i32 = arith.constant 0 : i32
    %c0_i32_0 = arith.constant 0 : i32
    %c0_i32_1 = arith.constant 0 : i32
    return %c0_i32, %c0_i32_0 : i32, i32
  }
  func.func @transform_2(%arg0: i32) -> (i32, i32) {
    %c0_i32 = arith.constant 0 : i32
    %c0_i32_0 = arith.constant 0 : i32
    %c0_i32_1 = arith.constant 0 : i32
    return %c0_i32, %c0_i32_0 : i32, i32
  }
  func.func @transform_3(%arg0: i32) -> (i32, i32) {
    %c0_i32 = arith.constant 0 : i32
    %c0_i32_0 = arith.constant 0 : i32
    return %arg0, %c0_i32 : i32, i32
  }
}

module attributes {stable_mosaic.version = 11 : i64} {
  func.func @_matmul_bias_kernel(%arg0: i32, %arg1: memref<16x512xf32, #tpu.memory_space<vmem>>, %arg2: memref<512x128xf32, #tpu.memory_space<vmem>>, %arg3: memref<1x128xf32, #tpu.memory_space<vmem>>, %arg4: memref<16x128xf32, #tpu.memory_space<vmem>>) attributes {dimension_semantics = [#tpu.dimension_semantics<parallel>], iteration_bounds = array<i64: 2>, scalar_prefetch = 0 : i64, scratch_operands = 0 : i64, tpu.core_type = #tpu.core_type<tc>, window_params = [{transform_indices = @transform_0, window_bounds = array<i64: 16, 512>}, {pipeline_mode = #tpu.pipeline_mode<synchronous>, transform_indices = @transform_1, window_bounds = array<i64: 512, 128>}, {pipeline_mode = #tpu.pipeline_mode<synchronous>, transform_indices = @transform_2, window_bounds = array<i64: 1, 128>}, {transform_indices = @transform_3, window_bounds = array<i64: 16, 128>}]} {
    %c0 = arith.constant 0 : index
    %c0_0 = arith.constant 0 : index
    %0 = vector.load %arg1[%c0, %c0_0] : memref<16x512xf32, #tpu.memory_space<vmem>>, vector<16x512xf32>
    %c0_1 = arith.constant 0 : index
    %c0_2 = arith.constant 0 : index
    %1 = vector.load %arg2[%c0_1, %c0_2] : memref<512x128xf32, #tpu.memory_space<vmem>>, vector<512x128xf32>
    %cst = arith.constant dense<0.000000e+00> : vector<16x128xf32>
    %2 = tpu.matmul %0, %1, %cst {dimension_numbers = #tpu.dot_dimension_numbers<[1], [0], [0], [1], [0, 0, 1, 1], [], []>} : vector<16x512xf32>, vector<512x128xf32>, vector<16x128xf32> -> vector<16x128xf32>
    %c0_3 = arith.constant 0 : index
    %c0_4 = arith.constant 0 : index
    %3 = vector.load %arg3[%c0_3, %c0_4] : memref<1x128xf32, #tpu.memory_space<vmem>>, vector<1x128xf32>
    %4 = vector.broadcast %3 : vector<1x128xf32> to vector<16x128xf32>
    %5 = arith.addf %2, %4 : vector<16x128xf32>
    %c0_5 = arith.constant 0 : index
    %c0_6 = arith.constant 0 : index
    %6 = vector.load %arg4[%c0_5, %c0_6] : memref<16x128xf32, #tpu.memory_space<vmem>>, vector<16x128xf32>
    tpu.vector_store %arg4[%c0_5, %c0_6], %5 {strides = array<i32>} : memref<16x128xf32, #tpu.memory_space<vmem>>, vector<16x128xf32>,
    return
  }
  func.func @transform_0(%arg0: i32) -> (i32, i32) {
    %c0_i32 = arith.constant 0 : i32
    %c0_i32_0 = arith.constant 0 : i32
    return %arg0, %c0_i32 : i32, i32
  }
  func.func @transform_1(%arg0: i32) -> (i32, i32) {
    %c0_i32 = arith.constant 0 : i32
    %c0_i32_0 = arith.constant 0 : i32
    %c0_i32_1 = arith.constant 0 : i32
    return %c0_i32, %c0_i32_0 : i32, i32
  }
  func.func @transform_2(%arg0: i32) -> (i32, i32) {
    %c0_i32 = arith.constant 0 : i32
    %c0_i32_0 = arith.constant 0 : i32
    %c0_i32_1 = arith.constant 0 : i32
    return %c0_i32, %c0_i32_0 : i32, i32
  }
  func.func @transform_3(%arg0: i32) -> (i32, i32) {
    %c0_i32 = arith.constant 0 : i32
    %c0_i32_0 = arith.constant 0 : i32
    return %arg0, %c0_i32 : i32, i32
  }
}

module attributes {stable_mosaic.version = 11 : i64} {
  func.func @_matmul_bias_kernel(%arg0: i32, %arg1: memref<16x144xf32, #tpu.memory_space<vmem>>, %arg2: memref<144x128xf32, #tpu.memory_space<vmem>>, %arg3: memref<1x128xf32, #tpu.memory_space<vmem>>, %arg4: memref<16x128xf32, #tpu.memory_space<vmem>>) attributes {dimension_semantics = [#tpu.dimension_semantics<parallel>], iteration_bounds = array<i64: 2>, scalar_prefetch = 0 : i64, scratch_operands = 0 : i64, tpu.core_type = #tpu.core_type<tc>, window_params = [{transform_indices = @transform_0, window_bounds = array<i64: 16, 144>}, {pipeline_mode = #tpu.pipeline_mode<synchronous>, transform_indices = @transform_1, window_bounds = array<i64: 144, 128>}, {pipeline_mode = #tpu.pipeline_mode<synchronous>, transform_indices = @transform_2, window_bounds = array<i64: 1, 128>}, {transform_indices = @transform_3, window_bounds = array<i64: 16, 128>}]} {
    %c0 = arith.constant 0 : index
    %c0_0 = arith.constant 0 : index
    %0 = vector.load %arg1[%c0, %c0_0] : memref<16x144xf32, #tpu.memory_space<vmem>>, vector<16x144xf32>
    %c0_1 = arith.constant 0 : index
    %c0_2 = arith.constant 0 : index
    %1 = vector.load %arg2[%c0_1, %c0_2] : memref<144x128xf32, #tpu.memory_space<vmem>>, vector<144x128xf32>
    %cst = arith.constant dense<0.000000e+00> : vector<16x128xf32>
    %2 = tpu.matmul %0, %1, %cst {dimension_numbers = #tpu.dot_dimension_numbers<[1], [0], [0], [1], [0, 0, 1, 1], [], []>} : vector<16x144xf32>, vector<144x128xf32>, vector<16x128xf32> -> vector<16x128xf32>
    %c0_3 = arith.constant 0 : index
    %c0_4 = arith.constant 0 : index
    %3 = vector.load %arg3[%c0_3, %c0_4] : memref<1x128xf32, #tpu.memory_space<vmem>>, vector<1x128xf32>
    %4 = vector.broadcast %3 : vector<1x128xf32> to vector<16x128xf32>
    %5 = arith.addf %2, %4 : vector<16x128xf32>
    %cst_5 = arith.constant 0.000000e+00 : f32
    %6 = vector.broadcast %cst_5 : f32 to vector<16x128xf32>
    %7 = arith.maximumf %5, %6 : vector<16x128xf32>
    %c0_6 = arith.constant 0 : index
    %c0_7 = arith.constant 0 : index
    %8 = vector.load %arg4[%c0_6, %c0_7] : memref<16x128xf32, #tpu.memory_space<vmem>>, vector<16x128xf32>
    tpu.vector_store %arg4[%c0_6, %c0_7], %7 {strides = array<i32>} : memref<16x128xf32, #tpu.memory_space<vmem>>, vector<16x128xf32>,
    return
  }
  func.func @transform_0(%arg0: i32) -> (i32, i32) {
    %c0_i32 = arith.constant 0 : i32
    %c0_i32_0 = arith.constant 0 : i32
    return %arg0, %c0_i32 : i32, i32
  }
  func.func @transform_1(%arg0: i32) -> (i32, i32) {
    %c0_i32 = arith.constant 0 : i32
    %c0_i32_0 = arith.constant 0 : i32
    %c0_i32_1 = arith.constant 0 : i32
    return %c0_i32, %c0_i32_0 : i32, i32
  }
  func.func @transform_2(%arg0: i32) -> (i32, i32) {
    %c0_i32 = arith.constant 0 : i32
    %c0_i32_0 = arith.constant 0 : i32
    %c0_i32_1 = arith.constant 0 : i32
    return %c0_i32, %c0_i32_0 : i32, i32
  }
  func.func @transform_3(%arg0: i32) -> (i32, i32) {
    %c0_i32 = arith.constant 0 : i32
    %c0_i32_0 = arith.constant 0 : i32
    return %arg0, %c0_i32 : i32, i32
  }
}

module attributes {stable_mosaic.version = 11 : i64} {
  func.func @_matmul_bias_kernel(%arg0: i32, %arg1: memref<64x288xf32, #tpu.memory_space<vmem>>, %arg2: memref<288x128xf32, #tpu.memory_space<vmem>>, %arg3: memref<1x128xf32, #tpu.memory_space<vmem>>, %arg4: memref<64x128xf32, #tpu.memory_space<vmem>>) attributes {dimension_semantics = [#tpu.dimension_semantics<parallel>], iteration_bounds = array<i64: 2>, scalar_prefetch = 0 : i64, scratch_operands = 0 : i64, tpu.core_type = #tpu.core_type<tc>, window_params = [{transform_indices = @transform_0, window_bounds = array<i64: 64, 288>}, {pipeline_mode = #tpu.pipeline_mode<synchronous>, transform_indices = @transform_1, window_bounds = array<i64: 288, 128>}, {pipeline_mode = #tpu.pipeline_mode<synchronous>, transform_indices = @transform_2, window_bounds = array<i64: 1, 128>}, {transform_indices = @transform_3, window_bounds = array<i64: 64, 128>}]} {
    %c0 = arith.constant 0 : index
    %c0_0 = arith.constant 0 : index
    %0 = vector.load %arg1[%c0, %c0_0] : memref<64x288xf32, #tpu.memory_space<vmem>>, vector<64x288xf32>
    %c0_1 = arith.constant 0 : index
    %c0_2 = arith.constant 0 : index
    %1 = vector.load %arg2[%c0_1, %c0_2] : memref<288x128xf32, #tpu.memory_space<vmem>>, vector<288x128xf32>
    %cst = arith.constant dense<0.000000e+00> : vector<64x128xf32>
    %2 = tpu.matmul %0, %1, %cst {dimension_numbers = #tpu.dot_dimension_numbers<[1], [0], [0], [1], [0, 0, 1, 1], [], []>} : vector<64x288xf32>, vector<288x128xf32>, vector<64x128xf32> -> vector<64x128xf32>
    %c0_3 = arith.constant 0 : index
    %c0_4 = arith.constant 0 : index
    %3 = vector.load %arg3[%c0_3, %c0_4] : memref<1x128xf32, #tpu.memory_space<vmem>>, vector<1x128xf32>
    %4 = vector.broadcast %3 : vector<1x128xf32> to vector<64x128xf32>
    %5 = arith.addf %2, %4 : vector<64x128xf32>
    %c0_5 = arith.constant 0 : index
    %c0_6 = arith.constant 0 : index
    %6 = vector.load %arg4[%c0_5, %c0_6] : memref<64x128xf32, #tpu.memory_space<vmem>>, vector<64x128xf32>
    tpu.vector_store %arg4[%c0_5, %c0_6], %5 {strides = array<i32>} : memref<64x128xf32, #tpu.memory_space<vmem>>, vector<64x128xf32>,
    return
  }
  func.func @transform_0(%arg0: i32) -> (i32, i32) {
    %c0_i32 = arith.constant 0 : i32
    %c0_i32_0 = arith.constant 0 : i32
    return %arg0, %c0_i32 : i32, i32
  }
  func.func @transform_1(%arg0: i32) -> (i32, i32) {
    %c0_i32 = arith.constant 0 : i32
    %c0_i32_0 = arith.constant 0 : i32
    %c0_i32_1 = arith.constant 0 : i32
    return %c0_i32, %c0_i32_0 : i32, i32
  }
  func.func @transform_2(%arg0: i32) -> (i32, i32) {
    %c0_i32 = arith.constant 0 : i32
    %c0_i32_0 = arith.constant 0 : i32
    %c0_i32_1 = arith.constant 0 : i32
    return %c0_i32, %c0_i32_0 : i32, i32
  }
  func.func @transform_3(%arg0: i32) -> (i32, i32) {
    %c0_i32 = arith.constant 0 : i32
    %c0_i32_0 = arith.constant 0 : i32
    return %arg0, %c0_i32 : i32, i32
  }
}

</mosaic_0001>

<bundles_post_ra>
// kernel: vqvae_forward.6
= control target key start
LH: loop header
LB: loop body
LE: loop exit
PB: predicated region body
PF: predicated region fallthrough
CT: control target
= control target key end

     0   :  { %s654_s12 = smov 0   ;;  %s886_s0 = inlined_call_operand.vmem [shape: f32[32,512], index: 0, kind: input, shape index: {}]   ;;  %s887_s1 = inlined_call_operand.vmem [shape: f32[512,128], index: 1, kind: input, shape index: {}]   ;;  %s888_s2 = inlined_call_operand.vmem [shape: f32[1,128], index: 2, kind: input, shape index: {}]   ;;  %s889_s3 = inlined_call_operand.vmem [shape: f32[32,128], index: 3, kind: output, shape index: {}]  }
   0x1 LB: > { %s464_s13 = sadd.s32 4294967295, %s632_s12   ;;  %p468_p0 = scmp.ge.s32.totalorder %s632_s12, 1  ;;  %s632_s12 = sphi %s654_s12, %s13_s12  }
   0x2   : > { %p139_p1 = scmp.lt.s32.totalorder %s632_s12, 3 }
   0x4   : > { %p140_p2 = pnand %p468_p0, %p139_p1 }
   0x5   : > { %v201_v0 = vld [vmem:[%s887_s1 + $0x80] sm:$0xff] (!%p140_p2)  ;;  %v202_v1 = vld [vmem:[%s887_s1 + $0x88] sm:$0xff] (!%p140_p2)  ;;  %v203_v11 = vld [vmem:[%s887_s1 + $0x90] sm:$0xff] (!%p140_p2)  ;;  %s707_s19 = sshll.u32 (!%p140_p2), %s464_s13, 1 }
   0x6   : > { %143 = sbr.rel (%p140_p2) target bundleno = 264 (0x108), region = 32  ;;  %v185_v2 = vld [vmem:[%s887_s1] sm:$0xff] (!%p140_p2)  ;;  %v554_v3 = vpack.c.bf16 (!%p140_p2), %v202_v1, %v201_v0  ;;  %v186_v4 = vld [vmem:[%s887_s1 + $0x8] sm:$0xff] (!%p140_p2)  ;;  %v204_v13 = vld [vmem:[%s887_s1 + $0x98] sm:$0xff] (!%p140_p2)  ;;  %p165_p3 = scmp.lt.s32.totalorder (!%p140_p2), %s707_s19, 3 }
   0x7   : > { %v233_v5 = vld [vmem:[%s887_s1 + $0x180] sm:$0xff] (!%p140_p2)  ;;  %v234_v6 = vld [vmem:[%s887_s1 + $0x188] sm:$0xff] (!%p140_p2)  ;;  %v556_v7 = vpack.c.bf16 (!%p140_p2), %v186_v4, %v185_v2  ;;  %v187_v14 = vld [vmem:[%s887_s1 + $0x10] sm:$0xff] (!%p140_p2)  ;;  %v558_v16 = vpack.c.bf16 (!%p140_p2), %v204_v13, %v203_v11 }
   0x8   : > { %v586_v8 = vpack.c.bf16 (!%p140_p2), %v234_v6, %v233_v5  ;;  %v217_v9 = vld [vmem:[%s887_s1 + $0x100] sm:$0xff] (!%p140_p2)  ;;  %v218_v10 = vld [vmem:[%s887_s1 + $0x108] sm:$0xff] (!%p140_p2)  ;;  %555 = vmatprep.subr.bf16.mxu0 (!%p140_p2), %v554_v3  ;;  %v188_v15 = vld [vmem:[%s887_s1 + $0x18] sm:$0xff] (!%p140_p2) }
   0x9   : > { %v588_v12 = vpack.c.bf16 (!%p140_p2), %v218_v10, %v217_v9  ;;  %557 = vmatpush3.bf16.msra.mxu0 (!%p140_p2), %v556_v7  ;;  %v560_v17 = vpack.c.bf16 (!%p140_p2), %v188_v15, %v187_v14  ;;  %v235_v18 = vld [vmem:[%s887_s1 + $0x190] sm:$0xff] (!%p140_p2)  ;;  %v236_v19 = vld [vmem:[%s887_s1 + $0x198] sm:$0xff] (!%p140_p2)  ;;  %v205_v23 = vld [vmem:[%s887_s1 + $0xa0] sm:$0xff] (!%p140_p2) }
   0xa   : > { %587 = vmatprep.subr.bf16.mxu1 (!%p140_p2), %v586_v8  ;;  %v219_v20 = vld [vmem:[%s887_s1 + $0x110] sm:$0xff] (!%p140_p2)  ;;  %v590_v21 = vpack.c.bf16 (!%p140_p2), %v236_v19, %v235_v18  ;;  %v220_v22 = vld [vmem:[%s887_s1 + $0x118] sm:$0xff] (!%p140_p2)  ;;  %v206_v24 = vld [vmem:[%s887_s1 + $0xa8] sm:$0xff] (!%p140_p2)  ;;  %559 = vmatprep.subr.bf16.mxu0 (!%p140_p2), %v558_v16 }
   0xb   : > { %589 = vmatpush3.bf16.msra.mxu1 (!%p140_p2), %v588_v12  ;;  %v592_v25 = vpack.c.bf16 (!%p140_p2), %v220_v22, %v219_v20  ;;  %v562_v26 = vpack.c.bf16 (!%p140_p2), %v206_v24, %v205_v23  ;;  %v189_v27 = vld [vmem:[%s887_s1 + $0x20] sm:$0xff] (!%p140_p2)  ;;  %v190_v28 = vld [vmem:[%s887_s1 + $0x28] sm:$0xff] (!%p140_p2)  ;;  %v207_v35 = vld [vmem:[%s887_s1 + $0xb0] sm:$0xff] (!%p140_p2) }
   0xc   : > { %v237_v29 = vld [vmem:[%s887_s1 + $0x1a0] sm:$0xff] (!%p140_p2)  ;;  %591 = vmatprep.subr.bf16.mxu1 (!%p140_p2), %v590_v21  ;;  %v238_v30 = vld [vmem:[%s887_s1 + $0x1a8] sm:$0xff] (!%p140_p2)  ;;  %v564_v33 = vpack.c.bf16 (!%p140_p2), %v190_v28, %v189_v27  ;;  %v208_v36 = vld [vmem:[%s887_s1 + $0xb8] sm:$0xff] (!%p140_p2) }
   0xd   : > { %v221_v31 = vld [vmem:[%s887_s1 + $0x120] sm:$0xff]  ;;  %v222_v32 = vld [vmem:[%s887_s1 + $0x128] sm:$0xff]  ;;  %561 = vmatpush3.bf16.msra.mxu0 %v560_v17  ;;  %v594_v34 = vpack.c.bf16 %v238_v30, %v237_v29  ;;  %v191_v37 = vld [vmem:[%s887_s1 + $0x30] sm:$0xff]  ;;  %v566_v39 = vpack.c.bf16 %v208_v36, %v207_v35  ;;  %s891_s19 = smov (!%p165_p3, %s707_s19), 3 }
   0xe   : > { %563 = vmatprep.subr.bf16.mxu0 %v562_v26  ;;  %v596_v38 = vpack.c.bf16 %v222_v32, %v221_v31  ;;  %v192_v40 = vld [vmem:[%s887_s1 + $0x38] sm:$0xff]  ;;  %v239_v41 = vld [vmem:[%s887_s1 + $0x1b0] sm:$0xff]  ;;  %v209_v46 = vld [vmem:[%s887_s1 + $0xc0] sm:$0xff]  ;;  %s477_s27 = sshll.u32 %s891_s19, 5  ;;  %s473_s25 = sshll.u32 %s891_s19, 3 }
   0xf   : > { %593 = vmatpush3.bf16.msra.mxu1 %v592_v25  ;;  %v240_v42 = vld [vmem:[%s887_s1 + $0x1b8] sm:$0xff]  ;;  %v223_v44 = vld [vmem:[%s887_s1 + $0x130] sm:$0xff]  ;;  %v210_v47 = vld [vmem:[%s887_s1 + $0xc8] sm:$0xff]  ;;  %v568_v48 = vpack.c.bf16 %v192_v40, %v191_v37  ;;  %s824_s17 = scalar_lea.vmem %s886_s0, %s477_s27  ;;  %s175_s27 = scalar_lea.vmem %s889_s3, %s473_s25 }
  0x10   : > { %595 = vmatprep.subr.bf16.mxu1 %v594_v34  ;;  %v598_v43 = vpack.c.bf16 %v240_v42, %v239_v41  ;;  %v224_v45 = vld [vmem:[%s887_s1 + $0x138] sm:$0xff]  ;;  %v241_v49 = vld [vmem:[%s887_s1 + $0x1c0] sm:$0xff]  ;;  %v242_v50 = vld [vmem:[%s887_s1 + $0x1c8] sm:$0xff]  ;;  %v570_v52 = vpack.c.bf16 %v210_v47, %v209_v46 }
  0x11   : > { %565 = vmatpush3.bf16.msra.mxu0 %v564_v33  ;;  %v600_v51 = vpack.c.bf16 %v224_v45, %v223_v44  ;;  %v193_v53 = vld [vmem:[%s887_s1 + $0x40] sm:$0xff]  ;;  %v194_v54 = vld [vmem:[%s887_s1 + $0x48] sm:$0xff]  ;;  %v602_v56 = vpack.c.bf16 %v242_v50, %v241_v49  ;;  %v211_v58 = vld [vmem:[%s887_s1 + $0xd0] sm:$0xff] }
  0x12   : > { %567 = vmatprep.subr.bf16.mxu0 %v566_v39  ;;  %v225_v55 = vld [vmem:[%s887_s1 + $0x140] sm:$0xff]  ;;  %v226_v57 = vld [vmem:[%s887_s1 + $0x148] sm:$0xff]  ;;  %v212_v59 = vld [vmem:[%s887_s1 + $0xd8] sm:$0xff]  ;;  %v572_v62 = vpack.c.bf16 %v194_v54, %v193_v53 }
  0x13   : > { %597 = vmatpush3.bf16.msra.mxu1 %v596_v38  ;;  %v243_v60 = vld [vmem:[%s887_s1 + $0x1d0] sm:$0xff]  ;;  %v244_v61 = vld [vmem:[%s887_s1 + $0x1d8] sm:$0xff]  ;;  %v604_v63 = vpack.c.bf16 %v226_v57, %v225_v55  ;;  %v574_v0 = vpack.c.bf16 %v212_v59, %v211_v58  ;;  %v213_v6 = vld [vmem:[%s887_s1 + $0xe0] sm:$0xff] }
  0x14   : > { %599 = vmatprep.subr.bf16.mxu1 %v598_v43  ;;  %v195_v1 = vld [vmem:[%s887_s1 + $0x50] sm:$0xff]  ;;  %v196_v2 = vld [vmem:[%s887_s1 + $0x58] sm:$0xff]  ;;  %v606_v4 = vpack.c.bf16 %v244_v61, %v243_v60  ;;  %v214_v7 = vld [vmem:[%s887_s1 + $0xe8] sm:$0xff] }
  0x15   : > { %569 = vmatpush3.bf16.msra.mxu0 %v568_v48  ;;  %v227_v3 = vld [vmem:[%s887_s1 + $0x150] sm:$0xff]  ;;  %v228_v5 = vld [vmem:[%s887_s1 + $0x158] sm:$0xff]  ;;  %v245_v8 = vld [vmem:[%s887_s1 + $0x1e0] sm:$0xff]  ;;  %v576_v10 = vpack.c.bf16 %v196_v2, %v195_v1  ;;  %v578_v14 = vpack.c.bf16 %v214_v7, %v213_v6 }
  0x16   : > { %571 = vmatprep.subr.bf16.mxu0 %v570_v52  ;;  %v246_v9 = vld [vmem:[%s887_s1 + $0x1e8] sm:$0xff]  ;;  %v197_v11 = vld [vmem:[%s887_s1 + $0x60] sm:$0xff]  ;;  %v608_v13 = vpack.c.bf16 %v228_v5, %v227_v3  ;;  %v215_v19 = vld [vmem:[%s887_s1 + $0xf0] sm:$0xff] }
  0x17   : > { %601 = vmatpush3.bf16.msra.mxu1 %v600_v51  ;;  %v198_v12 = vld [vmem:[%s887_s1 + $0x68] sm:$0xff]  ;;  %v229_v15 = vld [vmem:[%s887_s1 + $0x160] sm:$0xff]  ;;  %v610_v18 = vpack.c.bf16 %v246_v9, %v245_v8  ;;  %v216_v20 = vld [vmem:[%s887_s1 + $0xf8] sm:$0xff] }
  0x18   : > { %603 = vmatprep.subr.bf16.mxu1 %v602_v56  ;;  %v230_v16 = vld [vmem:[%s887_s1 + $0x168] sm:$0xff]  ;;  %v180_v21 = vld [vmem:[%s824_s17 + $0x18] sm:$0xff]  ;;  %v247_v22 = vld [vmem:[%s887_s1 + $0x1f0] sm:$0xff]  ;;  %v580_v24 = vpack.c.bf16 %v198_v12, %v197_v11  ;;  %v582_v26 = vpack.c.bf16 %v216_v20, %v215_v19 }
  0x19   : > { %573 = vmatpush3.bf16.msra.mxu0 %v572_v62  ;;  %v178_v17 = vld [vmem:[%s824_s17 + $0x8] sm:$0xff]  ;;  %v248_v23 = vld [vmem:[%s887_s1 + $0x1f8] sm:$0xff]  ;;  %395 = vmatprep.mubr.f32.mxu1 %v180_v21  ;;  %v612_v25 = vpack.c.bf16 %v230_v16, %v229_v15  ;;  %v199_v27 = vld [vmem:[%s887_s1 + $0x70] sm:$0xff] }
  0x1a   : > { %575 = vmatprep.subr.bf16.mxu0 %v574_v0  ;;  %320 = vmatprep.mubr.f32.mxu0 %v178_v17  ;;  %v200_v28 = vld [vmem:[%s887_s1 + $0x78] sm:$0xff]  ;;  %v614_v29 = vpack.c.bf16 %v248_v23, %v247_v22  ;;  %v231_v30 = vld [vmem:[%s887_s1 + $0x170] sm:$0xff]  ;;  %v177_v34 = vld [vmem:[%s824_s17] sm:$0xff] }
  0x1b   : > { %605 = vmatpush3.bf16.msra.mxu1 %v604_v63  ;;  %v232_v31 = vld [vmem:[%s887_s1 + $0x178] sm:$0xff]  ;;  %v584_v32 = vpack.c.bf16 %v200_v28, %v199_v27  ;;  %v179_v35 = vld [vmem:[%s824_s17 + $0x10] sm:$0xff]  ;;  %v182_v36 = vld [vmem:[%s824_s17 + $0x28] sm:$0xff] }
  0x1c   : > { %607 = vmatprep.subr.bf16.mxu1 %v606_v4  ;;  %v616_v33 = vpack.c.bf16 %v232_v31, %v231_v30  ;;  %v184_v37 = vld [vmem:[%s824_s17 + $0x38] sm:$0xff]  ;;  %v181_v38 = vld [vmem:[%s824_s17 + $0x20] sm:$0xff]  ;;  %v183_v39 = vld [vmem:[%s824_s17 + $0x30] sm:$0xff] }
  0x1d   : > { %577 = vmatpush3.bf16.msra.mxu0 %v576_v10  ;;  %v474_v41 = vld [vmem:[%s888_s2] ss:$0 sm:$0xff] }
  0x1e   : > { %579 = vmatprep.subr.bf16.mxu0 %v578_v14 }
  0x1f   : > { %609 = vmatpush3.bf16.msra.mxu1 %v608_v13 }
  0x20   : > { %611 = vmatprep.subr.bf16.mxu1 %v610_v18 }
  0x21   : > { %581 = vmatpush3.bf16.msra.mxu0 %v580_v24 }
  0x22   : > { %583 = vmatprep.subr.bf16.mxu0 %v582_v26 }
  0x23   : > { %613 = vmatpush3.bf16.msra.mxu1 %v612_v25 }
  0x24   : > { %615 = vmatprep.subr.bf16.mxu1 %v614_v29 }
  0x25   : > { %585 = vmatpush3.bf16.msra.mxu0 %v584_v32 }
  0x27   : > { %617 = vmatpush3.bf16.msra.mxu1 %v616_v33 }
  0x28   : > { %321 = vmatmul.mubr.f32.vlgmr.msra.gmra.mrb[0].mxu0 %v177_v34 }
  0x29   : > { %325 = vmatprep.mubr.f32.mxu0 %v182_v36 }
  0x2a   : > { %396 = vmatmul.mubr.f32.vlgmr.msra.gmra.mrb[0].mxu1 %v179_v35 }
  0x2b   : > { %400 = vmatprep.mubr.f32.mxu1 %v184_v37 }
  0x2c   : > { %326 = vmatmul.mubr.f32.gmra.mrb[2].mxu0 %v181_v38 }
  0x2e   : > { %401 = vmatmul.mubr.f32.gmra.mrb[2].mxu1 %v183_v39 }
  0xfb   : > { %v510_v40 = vpop.f32.mrb[0].mxu0 }
  0xfc   : > { %v511_v42 = vpop.f32.mrb[1].mxu0 }
  0xfd   : > { %v548_v43 = vpop.f32.mrb[0].mxu1  ;;  %v512_v44 = vadd.f32 %v511_v42, %v510_v40 }
  0xfe   : > { %v549_v45 = vpop.f32.mrb[1].mxu1 }
  0xff   : > { %v550_v46 = vadd.f32 %v549_v45, %v548_v43  ;;  %v323_v47 = vadd.f32 %v512_v44, %v474_v41  ;;  %v513_v48 = vpop.f32.mrb[2].mxu0 }
 0x100   : > { %v514_v49 = vpop.f32.mrb[3].mxu0 }
 0x101   : > { %v551_v50 = vpop.f32.mrb[2].mxu1  ;;  %v398_v51 = vadd.f32 %v550_v46, %v323_v47  ;;  %v515_v52 = vadd.f32 %v514_v49, %v513_v48 }
 0x102   : > { %v552_v53 = vpop.f32.mrb[3].mxu1 }
 0x103   : > { %v553_v54 = vadd.f32 %v552_v53, %v551_v50  ;;  %406 = vst [vmem:[%s175_s27] sm:$0xff] %v398_v51  ;;  %v328_v55 = vadd.f32 %v515_v52, %v474_v41 }
 0x105   : > { %v403_v56 = vadd.f32 %v553_v54, %v328_v55 }
 0x107   : > { %407 = vst [vmem:[%s175_s27 + $0x8] sm:$0xff] %v403_v56 }
 0x108 PF: > { %s13_s12 = sadd.s32 1, %s632_s12  }
 0x109   : > { %p10_p4 = scmp.ge.s32.totalorder %s13_s12, 4  }
 0x10b   :  { %12 = sbr.rel (!%p10_p4) target bundleno = 1 (0x1), region = 62 }

// kernel: vqvae_forward.5
= control target key start
LH: loop header
LB: loop body
LE: loop exit
PB: predicated region body
PF: predicated region fallthrough
CT: control target
= control target key end

     0   :  { %s509_s12 = smov 0   ;;  %s562_s0 = inlined_call_operand.vmem [shape: f32[128,48], index: 0, kind: input, shape index: {}]   ;;  %s563_s1 = inlined_call_operand.vmem [shape: f32[48,128], index: 1, kind: input, shape index: {}]   ;;  %s564_s2 = inlined_call_operand.vmem [shape: f32[1,128], index: 2, kind: input, shape index: {}]   ;;  %s565_s3 = inlined_call_operand.vmem [shape: f32[128,128], index: 3, kind: output, shape index: {}]  }
   0x1 LB: > { %s397_s13 = sadd.s32 4294967295, %s487_s12   ;;  %p401_p0 = scmp.ge.s32.totalorder %s487_s12, 1  ;;  %s487_s12 = sphi %s509_s12, %s13_s12  }
   0x2   : > { %p138_p1 = scmp.lt.s32.totalorder %s487_s12, 3 }
   0x4   : > { %p139_p2 = pnand %p401_p0, %p138_p1 }
   0x5   : > { %v182_v0 = vld [vmem:[%s563_s1] sm:$0xff] (!%p139_p2)  ;;  %v183_v1 = vld [vmem:[%s563_s1 + $0x8] sm:$0xff] (!%p139_p2)  ;;  %v184_v2 = vld [vmem:[%s563_s1 + $0x10] sm:$0xff] (!%p139_p2)  ;;  %s402_s20 = sshll.u32 (!%p139_p2), %s397_s13, 3  ;;  %vm195_vm0 = vcmask (!%p139_p2), 392192  }
   0x6   : > { %142 = sbr.rel (%p139_p2) target bundleno = 243 (0xf3), region = 32  ;;  %v455_v3 = vpack.c.bf16 (!%p139_p2), %v183_v1, %v182_v0  ;;  %v185_v4 = vld [vmem:[%s563_s1 + $0x18] sm:$0xff] (!%p139_p2)  ;;  %p163_p3 = scmp.lt.s32.totalorder (!%p139_p2), %s402_s20, 15  ;;  %v186_v6 = vld [vmem:[%s563_s1 + $0x20] sm:$0xff] (!%p139_p2)  ;;  %v187_v7 = vld [vmem:[%s563_s1 + $0x28] sm:$0xff] (!%p139_p2) }
   0x7   : > { %v459_v5 = vpack.c.bf16 (!%p139_p2), %v185_v4, %v184_v2  ;;  %v463_v8 = vpack.c.bf16 (!%p139_p2), %v187_v7, %v186_v6  ;;  %v406_v17 = vld [vmem:[%s564_s2] ss:$0 sm:$0xff] (!%p139_p2) }
   0x8   : > { %456 = vmatprep.subr.bf16.mxu0 (!%p139_p2), %v455_v3  ;;  %467 = vmatprep.subr.bf16.mxu1 (!%p139_p2), %v455_v3 }
   0x9   : > { %458 = vmatpush3.bf16.msra.mxu0 (!%p139_p2), %v455_v3  ;;  %470 = vmatpush3.bf16.msra.mxu1 (!%p139_p2), %v455_v3 }
   0xa   : > { %460 = vmatprep.subr.bf16.mxu0 (!%p139_p2), %v459_v5  ;;  %468 = vmatprep.subr.bf16.mxu1 (!%p139_p2), %v459_v5 }
   0xd   : > { %s567_s20 = smov (!%p163_p3, %s402_s20), 15  ;;  %462 = vmatpush3.bf16.msra.mxu0 %v459_v5  ;;  %471 = vmatpush3.bf16.msra.mxu1 %v459_v5 }
   0xe   : > { %s403_s27 = sshll.u32 %s567_s20, 3  ;;  %464 = vmatprep.subr.bf16.mxu0 %v463_v8  ;;  %469 = vmatprep.subr.bf16.mxu1 %v463_v8 }
   0xf   : > { %s166_s30 = scalar_lea.vmem %s562_s0, %s403_s27  ;;  %s172_s8 = scalar_lea.vmem %s565_s3, %s403_s27 }
  0x10   : > { %v174_v9 = vld [vmem:[%s166_s30] sm:$0xff]  ;;  %v175_v11 = vld [vmem:[%s166_s30 + $0x8] sm:$0xff]  ;;  %v176_v13 = vld [vmem:[%s166_s30 + $0x10] sm:$0xff] }
  0x11   : > { %v178_v10 = vld [vmem:[%s166_s30 + $0x20] sm:$0xff]  ;;  %443 = vmatprep.mubr.msk.f32.mxu0 %vm195_vm0, %v174_v9  ;;  %466 = vmatpush3.bf16.msra.mxu0 %v463_v8  ;;  %v179_v12 = vld [vmem:[%s166_s30 + $0x28] sm:$0xff]  ;;  %v180_v14 = vld [vmem:[%s166_s30 + $0x30] sm:$0xff] }
  0x12   : > { %449 = vmatprep.mubr.msk.f32.mxu1 %vm195_vm0, %v178_v10  ;;  %472 = vmatpush3.bf16.msra.mxu1 %v463_v8  ;;  %v177_v15 = vld [vmem:[%s166_s30 + $0x18] sm:$0xff] }
  0x13   : > { %v181_v16 = vld [vmem:[%s166_s30 + $0x38] sm:$0xff] }
  0x14   : > { %444 = vmatmul.mubr.msk.f32.vlgmr.msra.gmra.mrb[0].mxu0 %vm195_vm0, %v175_v11 }
  0x15   : > { %450 = vmatmul.mubr.msk.f32.vlgmr.msra.gmra.mrb[0].mxu1 %vm195_vm0, %v179_v12  ;;  %446 = vmatprep.mubr.msk.f32.mxu0 %vm195_vm0, %v176_v13 }
  0x16   : > { %452 = vmatprep.mubr.msk.f32.mxu1 %vm195_vm0, %v180_v14 }
  0x18   : > { %447 = vmatmul.mubr.msk.f32.gmra.mrb[2].mxu0 %vm195_vm0, %v177_v15 }
  0x19   : > { %453 = vmatmul.mubr.msk.f32.gmra.mrb[2].mxu1 %vm195_vm0, %v181_v16 }
  0xe7   : > { %v445_v18 = vpop.f32.mrb[0].mxu0 }
  0xe8   : > { %v451_v19 = vpop.f32.mrb[0].mxu1  ;;  %v292_v20 = vadd.f32 %v445_v18, %v406_v17  ;;  %v286_v22 = vpop.f32.mrb[1].mxu0 }
  0xe9   : > { %v312_v21 = vadd.f32 %v451_v19, %v406_v17  ;;  %v306_v23 = vpop.f32.mrb[1].mxu1  ;;  %v287_v24 = vadd.f32 %v406_v17, %v286_v22 }
  0xea   : > { %v307_v25 = vadd.f32 %v406_v17, %v306_v23  ;;  %v326_v26 = vmax.f32 %v292_v20, 0.0 }
  0xeb   : > { %v330_v27 = vmax.f32 %v312_v21, 0.0  ;;  %v325_v28 = vmax.f32 %v287_v24, 0.0  ;;  %v448_v30 = vpop.f32.mrb[2].mxu0 }
  0xec   : > { %v329_v29 = vmax.f32 %v307_v25, 0.0  ;;  %v454_v31 = vpop.f32.mrb[2].mxu1  ;;  %334 = vst [vmem:[%s172_s8 + $0x8] sm:$0xff] %v326_v26  ;;  %v302_v32 = vadd.f32 %v448_v30, %v406_v17  ;;  %v296_v34 = vpop.f32.mrb[3].mxu0 }
  0xed   : > { %338 = vst [vmem:[%s172_s8 + $0x28] sm:$0xff] %v330_v27  ;;  %v322_v33 = vadd.f32 %v454_v31, %v406_v17  ;;  %v316_v35 = vpop.f32.mrb[3].mxu1  ;;  %333 = vst [vmem:[%s172_s8] sm:$0xff] %v325_v28  ;;  %v297_v36 = vadd.f32 %v406_v17, %v296_v34 }
  0xee   : > { %337 = vst [vmem:[%s172_s8 + $0x20] sm:$0xff] %v329_v29  ;;  %v317_v37 = vadd.f32 %v406_v17, %v316_v35  ;;  %v328_v38 = vmax.f32 %v302_v32, 0.0 }
  0xef   : > { %v332_v39 = vmax.f32 %v322_v33, 0.0  ;;  %v327_v40 = vmax.f32 %v297_v36, 0.0 }
  0xf0   : > { %v331_v41 = vmax.f32 %v317_v37, 0.0  ;;  %336 = vst [vmem:[%s172_s8 + $0x18] sm:$0xff] %v328_v38 }
  0xf1   : > { %340 = vst [vmem:[%s172_s8 + $0x38] sm:$0xff] %v332_v39  ;;  %335 = vst [vmem:[%s172_s8 + $0x10] sm:$0xff] %v327_v40 }
  0xf2   : > { %339 = vst [vmem:[%s172_s8 + $0x30] sm:$0xff] %v331_v41 }
  0xf3 PF: > { %s13_s12 = sadd.s32 1, %s487_s12  }
  0xf4   : > { %p10_p4 = scmp.ge.s32.totalorder %s13_s12, 4  }
  0xf6   :  { %12 = sbr.rel (!%p10_p4) target bundleno = 1 (0x1), region = 62 }

// kernel: vqvae_forward.7
= control target key start
LH: loop header
LB: loop body
LE: loop exit
PB: predicated region body
PF: predicated region fallthrough
CT: control target
= control target key end

     0   :  { %s737_s18 = smov 0   ;;  %s829_s0 = inlined_call_operand.vmem [shape: f32[32,16], index: 0, kind: input, shape index: {}]   ;;  %s830_s1 = inlined_call_operand.vmem [shape: f32[16,128], index: 1, kind: input, shape index: {}]   ;;  %s831_s2 = inlined_call_operand.vmem [shape: f32[128,16], index: 2, kind: input, shape index: {}]   ;;  %s832_s3 = inlined_call_operand.vmem [shape: f32[1,128], index: 3, kind: input, shape index: {}]   ;;  %s833_s4 = inlined_call_operand.vmem [shape: f32[32,16], index: 4, kind: output, shape index: {0}]   ;;  %s834_s5 = inlined_call_operand.vmem [shape: s32[32,1], index: 5, kind: output, shape index: {1}]  }
   0x1 LB: > { %s569_s19 = sadd.s32 4294967295, %s704_s18   ;;  %p573_p0 = scmp.ge.s32.totalorder %s704_s18, 1  ;;  %s704_s18 = sphi %s737_s18, %s16_s18  }
   0x2   : > { %p191_p1 = scmp.lt.s32.totalorder %s704_s18, 3 }
   0x4   : > { %p192_p2 = pnand %p573_p0, %p191_p1 }
   0x5   : > { %v244_v0 = vld [vmem:[%s830_s1] sm:$0xff] (!%p192_p2)  ;;  %v245_v1 = vld [vmem:[%s830_s1 + $0x8] sm:$0xff] (!%p192_p2)  ;;  %s574_s24 = sshll.u32 (!%p192_p2), %s569_s19, 1  ;;  %vm262_vm0 = vcmask (!%p192_p2), 130048   ;;  %v359_v12 = vlaneseq (!%p192_p2)  ;;  %v248_v24 = vld [vmem:[%s831_s2 + $0x10] sm:$0xff] (!%p192_p2)  ;;  %vm476_vm5 = vcmask (!%p192_p2), 7168  }
   0x6   : > { %195 = sbr.rel (%p192_p2) target bundleno = 892 (0x37c), region = 36  ;;  %v653_v2 = vpack.c.bf16 (!%p192_p2), %v245_v1, %v244_v0  ;;  %p225_p3 = scmp.lt.s32.totalorder (!%p192_p2), %s574_s24, 3  ;;  %v582_v7 = vld [vmem:[%s832_s3] ss:$0 sm:$0xff] (!%p192_p2)  ;;  %v247_v23 = vld [vmem:[%s831_s2 + $0x8] sm:$0xff] (!%p192_p2)  ;;  %v249_v26 = vld [vmem:[%s831_s2 + $0x18] sm:$0xff] (!%p192_p2) }
   0x7   : > { %v762_v13 = vand.u32 (!%p192_p2), 127, %v359_v12  ;;  %v246_v22 = vld [vmem:[%s831_s2] sm:$0xff] (!%p192_p2)  ;;  %v661_v27 = vpack.c.bf16 (!%p192_p2), %v249_v26, %v248_v24  ;;  %v251_v29 = vld [vmem:[%s831_s2 + $0x28] sm:$0xff] (!%p192_p2)  ;;  %v252_v31 = vld [vmem:[%s831_s2 + $0x30] sm:$0xff] (!%p192_p2)  ;;  %v706_v63 = vmov (!%p192_p2), 1.0  }
   0x8   : > { %654 = vmatprep.subr.bf16.mxu0 (!%p192_p2), %v653_v2  ;;  %v657_v25 = vpack.c.bf16 (!%p192_p2), %v247_v23, %v246_v22  ;;  %v250_v28 = vld [vmem:[%s831_s2 + $0x20] sm:$0xff] (!%p192_p2)  ;;  %v253_v32 = vld [vmem:[%s831_s2 + $0x38] sm:$0xff] (!%p192_p2)  ;;  %v255_v35 = vld [vmem:[%s831_s2 + $0x48] sm:$0xff] (!%p192_p2) }
   0x9   : > { %656 = vmatpush3.bf16.msra.mxu0 (!%p192_p2), %v653_v2  ;;  %v665_v30 = vpack.c.bf16 (!%p192_p2), %v251_v29, %v250_v28  ;;  %v669_v33 = vpack.c.bf16 (!%p192_p2), %v253_v32, %v252_v31  ;;  %v254_v34 = vld [vmem:[%s831_s2 + $0x40] sm:$0xff] (!%p192_p2)  ;;  %v256_v37 = vld [vmem:[%s831_s2 + $0x50] sm:$0xff] (!%p192_p2)  ;;  %v257_v38 = vld [vmem:[%s831_s2 + $0x58] sm:$0xff] (!%p192_p2) }
   0xa   : > { %658 = vmatprep.subr.bf16.mxu1 (!%p192_p2), %v657_v25  ;;  %v673_v36 = vpack.c.bf16 (!%p192_p2), %v255_v35, %v254_v34  ;;  %v677_v39 = vpack.c.bf16 (!%p192_p2), %v257_v38, %v256_v37  ;;  %v258_v48 = vld [vmem:[%s831_s2 + $0x60] sm:$0xff] (!%p192_p2)  ;;  %v259_v49 = vld [vmem:[%s831_s2 + $0x68] sm:$0xff] (!%p192_p2)  ;;  %v260_v51 = vld [vmem:[%s831_s2 + $0x70] sm:$0xff] (!%p192_p2) }
   0xb   : > { %660 = vmatpush3.bf16.msra.mxu1 (!%p192_p2), %v657_v25  ;;  %v681_v50 = vpack.c.bf16 (!%p192_p2), %v259_v49, %v258_v48  ;;  %v261_v52 = vld [vmem:[%s831_s2 + $0x78] sm:$0xff] (!%p192_p2) }
   0xc   : > { %662 = vmatprep.subr.bf16.mxu1 (!%p192_p2), %v661_v27  ;;  %v685_v53 = vpack.c.bf16 (!%p192_p2), %v261_v52, %v260_v51 }
   0xd   : > { %s836_s24 = smov (!%p225_p3, %s574_s24), 3 }
   0xe   : > { %s751_s25 = sshll.u32 %s836_s24, 3 }
   0xf   : > { %s228_s28 = scalar_lea.vmem %s829_s0, %s751_s25  ;;  %664 = vmatpush3.bf16.msra.mxu1 %v661_v27  ;;  %s240_s17 = scalar_lea.vmem %s834_s5, %s751_s25 }
  0x10   : > { %v242_v3 = vld [vmem:[%s228_s28] sm:$0xff]  ;;  %v243_v4 = vld [vmem:[%s228_s28 + $0x8] sm:$0xff]  ;;  %666 = vmatprep.subr.bf16.mxu1 %v665_v30  ;;  %s234_s21 = scalar_lea.vmem %s833_s4, %s751_s25 }
  0x11   : > { %615 = vmatprep.mubr.msk.f32.mxu0 %vm262_vm0, %v242_v3 }
  0x12   : > { %616 = vmatmul.mubr.msk.f32.vlgmr.msra.gmra.mrb[0].mxu0 %vm262_vm0, %v243_v4 }
  0x13   : > { %668 = vmatpush3.bf16.msra.mxu1 %v665_v30 }
  0x14   : > { %670 = vmatprep.subr.bf16.mxu1 %v669_v33 }
  0x17   : > { %672 = vmatpush3.bf16.msra.mxu1 %v669_v33 }
  0x18   : > { %674 = vmatprep.subr.bf16.mxu1 %v673_v36 }
  0x1b   : > { %676 = vmatpush3.bf16.msra.mxu1 %v673_v36 }
  0x1c   : > { %678 = vmatprep.subr.bf16.mxu1 %v677_v39 }
  0x1f   : > { %680 = vmatpush3.bf16.msra.mxu1 %v677_v39 }
  0x20   : > { %682 = vmatprep.subr.bf16.mxu1 %v681_v50 }
  0x23   : > { %684 = vmatpush3.bf16.msra.mxu1 %v681_v50 }
  0x24   : > { %686 = vmatprep.subr.bf16.mxu1 %v685_v53 }
  0x27   : > { %688 = vmatpush3.bf16.msra.mxu1 %v685_v53 }
  0xe5   : > { %v617_v5 = vpop.f32.mrb[0].mxu0 }
  0xe6   : > { %v335_v6 = vpop.f32.mrb[1].mxu0  ;;  %v346_v9 = vmul.f32 2.0, %v617_v5 }
  0xe7   : > { %v345_v8 = vmul.f32 2.0, %v335_v6 }
  0xe8   : > { %v354_v11 = vsub.f32 %v582_v7, %v346_v9 }
  0xe9   : > { %v353_v10 = vsub.f32 %v582_v7, %v345_v8 }
  0xeb   : > { %355 = vmin.xlane.f32.xlu0 %v353_v10 }
  0xef   : > { %357 = vmin.xlane.f32.xlu0 %v354_v11 }
 0x178   : > { %v356_v14 = vpop.xlane.xlu0 %355 }
 0x179   : > { %vm361_vm1 = vcmp.le.f32.partialorder %v353_v10, %v356_v14 }
 0x17a   : > { %v363_v15 = vsel %vm361_vm1, %v762_v13, 128 }
 0x17b   : > { %v366_v16 = vshra.s32 %v363_v15, 16  ;;  %v365_v40 = vand.u32 65535, %v363_v15 }
 0x17c   : > { %v358_v17 = vpop.xlane.xlu0 %357 }
 0x17d   : > { %vm362_vm2 = vcmp.le.f32.partialorder %v354_v11, %v358_v17  ;;  %v368_v18 = vcvt.s32.f32 %v366_v16  ;;  %v367_v43 = vcvt.s32.f32 %v365_v40 }
 0x17e   : > { %v364_v19 = vsel %vm362_vm2, %v762_v13, 128 }
 0x17f   : > { %369 = vmin.xlane.f32.xlu1 %v368_v18  ;;  %v380_v20 = vshra.s32 %v364_v19, 16  ;;  %v379_v41 = vand.u32 65535, %v364_v19 }
 0x181   : > { %v382_v21 = vcvt.s32.f32 %v380_v20  ;;  %v381_v46 = vcvt.s32.f32 %v379_v41 }
 0x183   : > { %383 = vmin.xlane.f32.xlu1 %v382_v21 }
 0x20c   : > { %v370_v42 = vpop.xlane.xlu1 %369 }
 0x20d   : > { %vm371_vm3 = vcmp.eq.f32.partialorder %v368_v18, %v370_v42  ;;  %v376_v54 = vcvt.f32.s32 %v370_v42 }
 0x20e   : > { %v372_v44 = vsel %vm371_vm3, %v367_v43, inf }
 0x20f   : > { %373 = vmin.xlane.f32.xlu0 %v372_v44  ;;  %v377_v56 = vshll.u32 %v376_v54, 16 }
 0x210   : > { %v384_v45 = vpop.xlane.xlu1 %383 }
 0x211   : > { %vm385_vm4 = vcmp.eq.f32.partialorder %v382_v21, %v384_v45  ;;  %v390_v57 = vcvt.f32.s32 %v384_v45 }
 0x212   : > { %v386_v47 = vsel %vm385_vm4, %v381_v46, inf }
 0x213   : > { %387 = vmin.xlane.f32.xlu1 %v386_v47  ;;  %v391_v61 = vshll.u32 %v390_v57, 16 }
 0x29c   : > { %v374_v55 = vpop.xlane.xlu0 %373 }
 0x29d   : > { %v375_v58 = vcvt.f32.s32 %v374_v55 }
 0x29f   : > { %v378_v59 = vadd.s32 %v377_v56, %v375_v58 }
 0x2a0   : > { %v388_v60 = vpop.xlane.xlu1 %387 }
 0x2a1   : > { %477 = vst.msk [vmem:[%s240_s17] sm:$0xff] %vm476_vm5, %v378_v59  ;;  %v389_v62 = vcvt.f32.s32 %v388_v60  ;;  %vm393_vm6 = vcmp.eq.s32.totalorder %v762_v13, %v378_v59 }
 0x2a2   : > { %650 = vmatprep.mubr.msk.f32.mxu1 %vm393_vm6, %v706_v63 }
 0x2a3   : > { %v392_v0 = vadd.s32 %v391_v61, %v389_v62 }
 0x2a5   : > { %478 = vst.msk [vmem:[%s240_s17 + $0x8] sm:$0xff] %vm476_vm5, %v392_v0  ;;  %vm394_vm7 = vcmp.eq.s32.totalorder %v762_v13, %v392_v0 }
 0x2a6   : > { %651 = vmatmul.mubr.msk.f32.vlgmr.msra.gmra.mrb[0].mxu1 %vm394_vm7, %v706_v63 }
 0x379   : > { %v652_v1 = vpop.f32.mrb[0].mxu1 }
 0x37a   : > { %v465_v2 = vpop.f32.mrb[1].mxu1  ;;  %475 = vst.msk [vmem:[%s234_s21 + $0x8] sm:$0xff] %vm262_vm0, %v652_v1 }
 0x37b   : > { %474 = vst.msk [vmem:[%s234_s21] sm:$0xff] %vm262_vm0, %v465_v2 }
 0x37c PF: > { %s16_s18 = sadd.s32 1, %s704_s18  }
 0x37d   : > { %p13_p4 = scmp.ge.s32.totalorder %s16_s18, 4  }
 0x37f   :  { %15 = sbr.rel (!%p13_p4) target bundleno = 1 (0x1), region = 78 }

// kernel: vqvae_forward.8
= control target key start
LH: loop header
LB: loop body
LE: loop exit
PB: predicated region body
PF: predicated region fallthrough
CT: control target
= control target key end

     0   :  { %s447_s12 = smov 0   ;;  %s549_s0 = inlined_call_operand.vmem [shape: f32[32,144], index: 0, kind: input, shape index: {}]   ;;  %s550_s1 = inlined_call_operand.vmem [shape: f32[144,128], index: 1, kind: input, shape index: {}]   ;;  %s551_s2 = inlined_call_operand.vmem [shape: f32[1,128], index: 2, kind: input, shape index: {}]   ;;  %s552_s3 = inlined_call_operand.vmem [shape: f32[32,128], index: 3, kind: output, shape index: {}]  }
   0x1 LB: > { %s348_s13 = sadd.s32 4294967295, %s424_s12   ;;  %p352_p0 = scmp.ge.s32.totalorder %s424_s12, 1  ;;  %s424_s12 = sphi %s447_s12, %s13_s12  }
   0x2   : > { %p139_p1 = scmp.lt.s32.totalorder %s424_s12, 3 }
   0x4   : > { %p140_p2 = pnand %p352_p0, %p139_p1 }
   0x5   : > { %v181_v0 = vld [vmem:[%s550_s1] sm:$0xff] (!%p140_p2)  ;;  %v182_v1 = vld [vmem:[%s550_s1 + $0x8] sm:$0xff] (!%p140_p2)  ;;  %v183_v2 = vld [vmem:[%s550_s1 + $0x10] sm:$0xff] (!%p140_p2)  ;;  %s353_s20 = sshll.u32 (!%p140_p2), %s348_s13, 1  ;;  %v426_v3 = vmov (!%p140_p2), 0.0|0.0   ;;  %vm206_vm0 = vcmask (!%p140_p2), 130048  }
   0x6   : > { %143 = sbr.rel (%p140_p2) target bundleno = 260 (0x104), region = 32  ;;  %364 = vmatprep.subr.bf16.mxu0 (!%p140_p2), %v426_v3  ;;  %391 = vmatprep.subr.bf16.mxu1 (!%p140_p2), %v426_v3  ;;  %v365_v4 = vpack.c.bf16 (!%p140_p2), %v182_v1, %v181_v0  ;;  %v184_v5 = vld [vmem:[%s550_s1 + $0x18] sm:$0xff] (!%p140_p2)  ;;  %p165_p3 = scmp.lt.s32.totalorder (!%p140_p2), %s353_s20, 3  ;;  %v185_v7 = vld [vmem:[%s550_s1 + $0x20] sm:$0xff] (!%p140_p2)  ;;  %v186_v8 = vld [vmem:[%s550_s1 + $0x28] sm:$0xff] (!%p140_p2) }
   0x7   : > { %v368_v6 = vpack.c.bf16 (!%p140_p2), %v184_v5, %v183_v2  ;;  %v371_v9 = vpack.c.bf16 (!%p140_p2), %v186_v8, %v185_v7  ;;  %v187_v12 = vld [vmem:[%s550_s1 + $0x30] sm:$0xff] (!%p140_p2)  ;;  %v188_v13 = vld [vmem:[%s550_s1 + $0x38] sm:$0xff] (!%p140_p2)  ;;  %v189_v15 = vld [vmem:[%s550_s1 + $0x40] sm:$0xff] (!%p140_p2) }
   0x8   : > { %366 = vmatpush1.bf16.msra.mxu0 (!%p140_p2), %v365_v4  ;;  %400 = vmatpush1.bf16.msra.mxu1 (!%p140_p2), %v365_v4  ;;  %v374_v14 = vpack.c.bf16 (!%p140_p2), %v188_v13, %v187_v12  ;;  %v190_v16 = vld [vmem:[%s550_s1 + $0x48] sm:$0xff] (!%p140_p2)  ;;  %v191_v18 = vld [vmem:[%s550_s1 + $0x50] sm:$0xff] (!%p140_p2)  ;;  %v192_v19 = vld [vmem:[%s550_s1 + $0x58] sm:$0xff] (!%p140_p2) }
   0x9   : > { %367 = vmatprep.subr.bf16.mxu0 (!%p140_p2), %v426_v3  ;;  %392 = vmatprep.subr.bf16.mxu1 (!%p140_p2), %v426_v3  ;;  %v377_v17 = vpack.c.bf16 (!%p140_p2), %v190_v16, %v189_v15  ;;  %v380_v20 = vpack.c.bf16 (!%p140_p2), %v192_v19, %v191_v18  ;;  %v193_v21 = vld [vmem:[%s550_s1 + $0x60] sm:$0xff] (!%p140_p2)  ;;  %v194_v22 = vld [vmem:[%s550_s1 + $0x68] sm:$0xff] (!%p140_p2)  ;;  %v195_v24 = vld [vmem:[%s550_s1 + $0x70] sm:$0xff] (!%p140_p2) }
   0xa   : > { %v383_v23 = vpack.c.bf16 (!%p140_p2), %v194_v22, %v193_v21  ;;  %v196_v25 = vld [vmem:[%s550_s1 + $0x78] sm:$0xff] (!%p140_p2)  ;;  %v197_v27 = vld [vmem:[%s550_s1 + $0x80] sm:$0xff] (!%p140_p2)  ;;  %v198_v28 = vld [vmem:[%s550_s1 + $0x88] sm:$0xff] (!%p140_p2) }
   0xb   : > { %v386_v26 = vpack.c.bf16 (!%p140_p2), %v196_v25, %v195_v24  ;;  %v389_v29 = vpack.c.bf16 (!%p140_p2), %v198_v28, %v197_v27  ;;  %v358_v32 = vld [vmem:[%s551_s2] ss:$0 sm:$0xff] (!%p140_p2) }
   0xc   : > { %369 = vmatpush1.bf16.msra.mxu0 (!%p140_p2), %v368_v6  ;;  %401 = vmatpush1.bf16.msra.mxu1 (!%p140_p2), %v368_v6 }
   0xd   : > { %s554_s20 = smov (!%p165_p3, %s353_s20), 3  ;;  %370 = vmatprep.subr.bf16.mxu0 %v426_v3  ;;  %393 = vmatprep.subr.bf16.mxu1 %v426_v3 }
   0xe   : > { %s363_s27 = sshll.u32 %s554_s20, 4  ;;  %s357_s6 = sshll.u32 %s554_s20, 3 }
   0xf   : > { %s483_s30 = scalar_lea.vmem %s549_s0, %s363_s27  ;;  %s175_s9 = scalar_lea.vmem %s552_s3, %s357_s6 }
  0x10   : > { %v178_v10 = vld [vmem:[%s483_s30 + $0x8] sm:$0xff]  ;;  %v180_v11 = vld [vmem:[%s483_s30 + $0x18] sm:$0xff]  ;;  %372 = vmatpush1.bf16.msra.mxu0 %v371_v9  ;;  %402 = vmatpush1.bf16.msra.mxu1 %v371_v9  ;;  %v177_v30 = vld [vmem:[%s483_s30] sm:$0xff] }
  0x11   : > { %359 = vmatprep.mubr.msk.f32.mxu0 %vm206_vm0, %v178_v10  ;;  %360 = vmatprep.mubr.msk.f32.mxu1 %vm206_vm0, %v180_v11  ;;  %v179_v31 = vld [vmem:[%s483_s30 + $0x10] sm:$0xff] }
  0x12   : > { %373 = vmatprep.subr.bf16.mxu0 %v426_v3  ;;  %394 = vmatprep.subr.bf16.mxu1 %v426_v3 }
  0x14   : > { %375 = vmatpush1.bf16.msra.mxu0 %v374_v14  ;;  %403 = vmatpush1.bf16.msra.mxu1 %v374_v14 }
  0x15   : > { %376 = vmatprep.subr.bf16.mxu0 %v426_v3  ;;  %395 = vmatprep.subr.bf16.mxu1 %v426_v3 }
  0x18   : > { %378 = vmatpush1.bf16.msra.mxu0 %v377_v17  ;;  %404 = vmatpush1.bf16.msra.mxu1 %v377_v17 }
  0x19   : > { %379 = vmatprep.subr.bf16.mxu0 %v426_v3  ;;  %396 = vmatprep.subr.bf16.mxu1 %v426_v3 }
  0x1c   : > { %381 = vmatpush1.bf16.msra.mxu0 %v380_v20  ;;  %405 = vmatpush1.bf16.msra.mxu1 %v380_v20 }
  0x1d   : > { %382 = vmatprep.subr.bf16.mxu0 %v426_v3  ;;  %397 = vmatprep.subr.bf16.mxu1 %v426_v3 }
  0x20   : > { %384 = vmatpush1.bf16.msra.mxu0 %v383_v23  ;;  %406 = vmatpush1.bf16.msra.mxu1 %v383_v23 }
  0x21   : > { %385 = vmatprep.subr.bf16.mxu0 %v426_v3  ;;  %398 = vmatprep.subr.bf16.mxu1 %v426_v3 }
  0x24   : > { %387 = vmatpush1.bf16.msra.mxu0 %v386_v26  ;;  %407 = vmatpush1.bf16.msra.mxu1 %v386_v26 }
  0x25   : > { %388 = vmatprep.subr.bf16.mxu0 %v426_v3  ;;  %399 = vmatprep.subr.bf16.mxu1 %v426_v3 }
  0x28   : > { %390 = vmatpush1.bf16.msra.mxu0 %v389_v29  ;;  %408 = vmatpush1.bf16.msra.mxu1 %v389_v29 }
  0x2b   : > { %278 = vmatmul.mubr.f32.vlgmr.msra.gmra.mrb[0].mxu0 %v177_v30  ;;  %283 = vmatmul.mubr.f32.vlgmr.msra.gmra.mrb[0].mxu1 %v179_v31 }
  0xfe   : > { %v279_v33 = vpop.f32.mrb[0].mxu0  ;;  %v284_v34 = vpop.f32.mrb[0].mxu1 }
  0xff   : > { %v280_v35 = vadd.f32 %v358_v32, %v279_v33  ;;  %v285_v36 = vadd.f32 %v358_v32, %v284_v34  ;;  %v281_v37 = vpop.f32.mrb[1].mxu0  ;;  %v286_v38 = vpop.f32.mrb[1].mxu1 }
 0x101   : > { %v288_v39 = vmax.f32 %v280_v35, 0.0  ;;  %v289_v40 = vmax.f32 %v285_v36, 0.0 }
 0x103   : > { %290 = vst [vmem:[%s175_s9] sm:$0xff] %v288_v39  ;;  %291 = vst [vmem:[%s175_s9 + $0x8] sm:$0xff] %v289_v40 }
 0x104 PF: > { %s13_s12 = sadd.s32 1, %s424_s12  }
 0x105   : > { %p10_p4 = scmp.ge.s32.totalorder %s13_s12, 4  }
 0x107   :  { %12 = sbr.rel (!%p10_p4) target bundleno = 1 (0x1), region = 62 }

// kernel: squeeze.1
= control target key start
LH: loop header
LB: loop body
LE: loop exit
PB: predicated region body
PF: predicated region fallthrough
CT: control target
= control target key end

     0   :  { %s146_s0 = inlined_call_operand.vmem [shape: s32[32], index: 0, kind: input, shape index: {}]   ;;  %s147_s1 = inlined_call_operand.hbm [shape: s32[2,4,4], index: 1, kind: output, shape index: {}]  }
   0x1   :  { %v5_v0 = vld [vmem:[%s146_s0] sm:$0x1] }
   0x2   :  { %6 = vst [vmem:[#allocation3] sm:$0x1] %v5_v0 }
   0x3   :  { %2 = vsyncpa [#allocation1], 0  ;;  %s105_s0 = smov 124   ;;  %s106_s8 = smov 116   ;;  %vm8_vm0 = vcmask 31744  }
   0x4   :  { %s107_s9 = smov 120   ;;  %s108_s10 = smov 112  }
   0x5   :  { %s109_s11 = smov 108   ;;  %s110_s12 = smov 104  }
   0x6   :  { %s111_s13 = smov 100   ;;  %s112_s14 = smov [#allocation0]  }
   0x7   :  { %s67_s15 = sshll.u32 %s112_s14, 4  ;;  %s68_s15 = int_to_ptr.vmem [resolvable:$true] %s67_s15 }
   0x8   :  { %s81_s16 = scalar_lea.vmem %s68_s15, 128  ;;  %p86_p1 = scmp.lt.s32.totalorder %s68_s15, %s68_s15 }
   0x9   :  { %v10_v1 = vld [vmem:[#allocation3] sm:$0x1]   ;;  %p82_p0 = scmp.ne.s32.totalorder %s68_s15, %s81_s16  ;;  %p87_p2 = scmp.lt.s32.totalorder %s81_s16, %s81_s16 }
   0xa   :  { %v22_v2 = vld [vmem:[#allocation3] sm:$0x1]   ;;  %11 = vrot.lane.b32.xlu0 %v10_v1, %s105_s0 }
   0xb   :  { %23 = vrot.lane.b32.xlu1 %v22_v2, %s106_s8  ;;  %v16_v3 = vld [vmem:[#allocation3] sm:$0x1]   ;;  %p88_p3 = por %p87_p2, %p86_p1 }
   0xc   :  { %v28_v4 = vld [vmem:[#allocation3] sm:$0x1]  }
   0xd   :  { %v7_v5 = vld [vmem:[#allocation3] sm:$0x1]   ;;  %p89_p4 = pnand %p88_p3, %p82_p0 }
   0xe   :  { %9 = vst.msk [vmem:[#allocation2] sm:$0x1] %vm8_vm0, %v7_v5   ;;  %17 = vrot.lane.b32.xlu0 %v16_v3, %s107_s9  ;;  %v34_v6 = vld [vmem:[#allocation3] sm:$0x1]  }
   0xf   :  { %29 = vrot.lane.b32.xlu1 %v28_v4, %s108_s10  ;;  %v40_v7 = vld [vmem:[#allocation3] sm:$0x1]  }
  0x10   :  { %v46_v8 = vld [vmem:[#allocation3] sm:$0x1]  }
  0x12   :  { %35 = vrot.lane.b32.xlu0 %v34_v6, %s109_s11 }
  0x13   :  { %41 = vrot.lane.b32.xlu1 %v40_v7, %s110_s12 }
  0x16   :  { %47 = vrot.lane.b32.xlu0 %v46_v8, %s111_s13 }
  0x7c   :  { %v12_v9 = vpop.permute.xlu0 %11  }
  0x7d   :  { %v24_v10 = vpop.permute.xlu1 %23   ;;  %15 = vst.msk [vmem:[#allocation2 + $0x1] sm:$0x1] %vm8_vm0, %v12_v9  }
  0x7e   :  { %27 = vst.msk [vmem:[#allocation2 + $0x3] sm:$0x1] %vm8_vm0, %v24_v10  }
  0x80   :  { %v18_v11 = vpop.permute.xlu0 %17  }
  0x81   :  { %v30_v12 = vpop.permute.xlu1 %29   ;;  %21 = vst.msk [vmem:[#allocation2 + $0x2] sm:$0x1] %vm8_vm0, %v18_v11  }
  0x82   :  { %33 = vst.msk [vmem:[#allocation2 + $0x8] sm:$0x1] %vm8_vm0, %v30_v12  }
  0x84   :  { %v36_v13 = vpop.permute.xlu0 %35  }
  0x85   :  { %v42_v14 = vpop.permute.xlu1 %41   ;;  %39 = vst.msk [vmem:[#allocation2 + $0x9] sm:$0x1] %vm8_vm0, %v36_v13  }
  0x86   :  { %45 = vst.msk [vmem:[#allocation2 + $0xa] sm:$0x1] %vm8_vm0, %v42_v14  }
  0x88   :  { %v48_v15 = vpop.permute.xlu0 %47   ;;  %v55_v16 = vld [vmem:[#allocation2] sm:$0xf] }
  0x89   :  { %51 = vst.msk [vmem:[#allocation2 + $0xb] sm:$0x1] %vm8_vm0, %v48_v15   ;;  %57 = vst [vmem:[#allocation0] sm:$0xf] %v55_v16 }
  0x90   :  { %v59_v17 = vld [vmem:[#allocation2 + $0x8] sm:$0xf] }
  0x91   :  { %62 = vst [vmem:[#allocation0 + $0x4] sm:$0xf] %v59_v17 }
  0x92   :  { %92 = shalt.err (!%p89_p4)
}
  0x93   :  { %s93_s19 = scalar_lea.hbm %s147_s1, 128 }
  0x94   :  { %p94_p5 = scmp.ne.s32.totalorder %s147_s1, %s93_s19  ;;  %p97_p6 = scmp.lt.u32.totalorder %s93_s19, %s147_s1 }
  0x96   :  { %p99_p7 = pnand %p97_p6, %p94_p5 }
  0x98   :  { %102 = shalt.err (!%p99_p7)
}
  0x99   :  { %70 = dma.vmem_to_hbm [thread:$0]  %s68_s15, 128, %s147_s1, [#allocation1]  }
  0x9a   :  { %103 = dma.done.wait [#allocation1], 128  }
  0x9b   :  { %104 = vsyncadd [#allocation1], 4294967168 }
  0x9c   :  { %72 = vsyncpa [#allocation1], 1 }

// kernel: vqvae_forward.9
= control target key start
LH: loop header
LB: loop body
LE: loop exit
PB: predicated region body
PF: predicated region fallthrough
CT: control target
= control target key end

     0   :  { %s744_s12 = smov 0   ;;  %s920_s0 = inlined_call_operand.vmem [shape: f32[128,288], index: 0, kind: input, shape index: {}]   ;;  %s921_s1 = inlined_call_operand.vmem [shape: f32[288,128], index: 1, kind: input, shape index: {}]   ;;  %s922_s2 = inlined_call_operand.vmem [shape: f32[1,128], index: 2, kind: input, shape index: {}]   ;;  %s923_s3 = inlined_call_operand.vmem [shape: f32[128,128], index: 3, kind: output, shape index: {}]  }
   0x1 LB: > { %s543_s13 = sadd.s32 4294967295, %s722_s12   ;;  %p547_p0 = scmp.ge.s32.totalorder %s722_s12, 1  ;;  %s722_s12 = sphi %s744_s12, %s13_s12  }
   0x2   : > { %p139_p1 = scmp.lt.s32.totalorder %s722_s12, 3 }
   0x4   : > { %p140_p2 = pnand %p547_p0, %p139_p1 }
   0x5   : > { %v217_v0 = vld [vmem:[%s921_s1 + $0x80] sm:$0xff] (!%p140_p2)  ;;  %v218_v1 = vld [vmem:[%s921_s1 + $0x88] sm:$0xff] (!%p140_p2)  ;;  %s548_s20 = sshll.u32 (!%p140_p2), %s543_s13, 3  ;;  %v219_v5 = vld [vmem:[%s921_s1 + $0x90] sm:$0xff] (!%p140_p2)  ;;  %vm244_vm0 = vcmask (!%p140_p2), 261120  }
   0x6   : > { %143 = sbr.rel (%p140_p2) target bundleno = 280 (0x118), region = 32  ;;  %v201_v2 = vld [vmem:[%s921_s1] sm:$0xff] (!%p140_p2)  ;;  %v651_v3 = vpack.c.bf16 (!%p140_p2), %v218_v1, %v217_v0  ;;  %v202_v4 = vld [vmem:[%s921_s1 + $0x8] sm:$0xff] (!%p140_p2)  ;;  %v220_v6 = vld [vmem:[%s921_s1 + $0x98] sm:$0xff] (!%p140_p2)  ;;  %p165_p3 = scmp.lt.s32.totalorder (!%p140_p2), %s548_s20, 15 }
   0x7   : > { %v653_v7 = vpack.c.bf16 (!%p140_p2), %v202_v4, %v201_v2  ;;  %v655_v8 = vpack.c.bf16 (!%p140_p2), %v220_v6, %v219_v5  ;;  %v203_v9 = vld [vmem:[%s921_s1 + $0x10] sm:$0xff] (!%p140_p2)  ;;  %v204_v10 = vld [vmem:[%s921_s1 + $0x18] sm:$0xff] (!%p140_p2)  ;;  %v221_v11 = vld [vmem:[%s921_s1 + $0xa0] sm:$0xff] (!%p140_p2) }
   0x8   : > { %652 = vmatprep.subr.bf16.mxu0 (!%p140_p2), %v651_v3  ;;  %691 = vmatprep.subr.bf16.mxu1 (!%p140_p2), %v651_v3  ;;  %v222_v12 = vld [vmem:[%s921_s1 + $0xa8] sm:$0xff] (!%p140_p2)  ;;  %v657_v13 = vpack.c.bf16 (!%p140_p2), %v204_v10, %v203_v9  ;;  %v205_v15 = vld [vmem:[%s921_s1 + $0x20] sm:$0xff] (!%p140_p2)  ;;  %v223_v17 = vld [vmem:[%s921_s1 + $0xb0] sm:$0xff] (!%p140_p2) }
   0x9   : > { %654 = vmatpush3.bf16.msra.mxu0 (!%p140_p2), %v653_v7  ;;  %699 = vmatpush3.bf16.msra.mxu1 (!%p140_p2), %v653_v7  ;;  %v659_v14 = vpack.c.bf16 (!%p140_p2), %v222_v12, %v221_v11  ;;  %v206_v16 = vld [vmem:[%s921_s1 + $0x28] sm:$0xff] (!%p140_p2)  ;;  %v224_v18 = vld [vmem:[%s921_s1 + $0xb8] sm:$0xff] (!%p140_p2)  ;;  %v207_v21 = vld [vmem:[%s921_s1 + $0x30] sm:$0xff] (!%p140_p2) }
   0xa   : > { %656 = vmatprep.subr.bf16.mxu0 (!%p140_p2), %v655_v8  ;;  %692 = vmatprep.subr.bf16.mxu1 (!%p140_p2), %v655_v8  ;;  %v661_v19 = vpack.c.bf16 (!%p140_p2), %v206_v16, %v205_v15  ;;  %v663_v20 = vpack.c.bf16 (!%p140_p2), %v224_v18, %v223_v17  ;;  %v208_v22 = vld [vmem:[%s921_s1 + $0x38] sm:$0xff] (!%p140_p2)  ;;  %v225_v23 = vld [vmem:[%s921_s1 + $0xc0] sm:$0xff] (!%p140_p2)  ;;  %v226_v24 = vld [vmem:[%s921_s1 + $0xc8] sm:$0xff] (!%p140_p2) }
   0xb   : > { %v665_v27 = vpack.c.bf16 (!%p140_p2), %v208_v22, %v207_v21  ;;  %v667_v28 = vpack.c.bf16 (!%p140_p2), %v226_v24, %v225_v23  ;;  %v209_v29 = vld [vmem:[%s921_s1 + $0x40] sm:$0xff] (!%p140_p2)  ;;  %v210_v30 = vld [vmem:[%s921_s1 + $0x48] sm:$0xff] (!%p140_p2)  ;;  %v227_v31 = vld [vmem:[%s921_s1 + $0xd0] sm:$0xff] (!%p140_p2) }
   0xc   : > { %v228_v32 = vld [vmem:[%s921_s1 + $0xd8] sm:$0xff] (!%p140_p2)  ;;  %v669_v33 = vpack.c.bf16 (!%p140_p2), %v210_v30, %v209_v29  ;;  %v211_v35 = vld [vmem:[%s921_s1 + $0x50] sm:$0xff] (!%p140_p2)  ;;  %v229_v37 = vld [vmem:[%s921_s1 + $0xe0] sm:$0xff] (!%p140_p2) }
   0xd   : > { %s925_s20 = smov (!%p165_p3, %s548_s20), 15  ;;  %658 = vmatpush3.bf16.msra.mxu0 %v657_v13  ;;  %700 = vmatpush3.bf16.msra.mxu1 %v657_v13  ;;  %v671_v34 = vpack.c.bf16 %v228_v32, %v227_v31  ;;  %v212_v36 = vld [vmem:[%s921_s1 + $0x58] sm:$0xff]  ;;  %v230_v38 = vld [vmem:[%s921_s1 + $0xe8] sm:$0xff]  ;;  %v213_v41 = vld [vmem:[%s921_s1 + $0x60] sm:$0xff] }
   0xe   : > { %s707_s13 = smul.u32 24, %s925_s20  ;;  %660 = vmatprep.subr.bf16.mxu0 %v659_v14  ;;  %693 = vmatprep.subr.bf16.mxu1 %v659_v14  ;;  %v673_v39 = vpack.c.bf16 %v212_v36, %v211_v35  ;;  %v675_v40 = vpack.c.bf16 %v230_v38, %v229_v37  ;;  %v214_v42 = vld [vmem:[%s921_s1 + $0x68] sm:$0xff]  ;;  %v231_v43 = vld [vmem:[%s921_s1 + $0xf0] sm:$0xff]  ;;  %v232_v44 = vld [vmem:[%s921_s1 + $0xf8] sm:$0xff] }
   0xf   : > { %v677_v45 = vpack.c.bf16 %v214_v42, %v213_v41  ;;  %v679_v46 = vpack.c.bf16 %v232_v44, %v231_v43  ;;  %v215_v47 = vld [vmem:[%s921_s1 + $0x70] sm:$0xff]  ;;  %v216_v48 = vld [vmem:[%s921_s1 + $0x78] sm:$0xff]  ;;  %v233_v49 = vld [vmem:[%s921_s1 + $0x100] sm:$0xff] }
  0x10   : > { %s800_s21 = scalar_lea.vmem %s920_s0, %s707_s13  ;;  %v234_v50 = vld [vmem:[%s921_s1 + $0x108] sm:$0xff]  ;;  %v681_v51 = vpack.c.bf16 %v216_v48, %v215_v47  ;;  %v235_v53 = vld [vmem:[%s921_s1 + $0x110] sm:$0xff]  ;;  %v236_v54 = vld [vmem:[%s921_s1 + $0x118] sm:$0xff] }
  0x11   : > { %v178_v25 = vld [vmem:[%s800_s21 + $0x8] sm:$0xff]  ;;  %v196_v26 = vld [vmem:[%s800_s21 + $0x98] sm:$0xff]  ;;  %662 = vmatpush3.bf16.msra.mxu0 %v661_v19  ;;  %701 = vmatpush3.bf16.msra.mxu1 %v661_v19  ;;  %v683_v52 = vpack.c.bf16 %v234_v50, %v233_v49  ;;  %v177_v55 = vld [vmem:[%s800_s21] sm:$0xff]  ;;  %v687_v58 = vpack.c.bf16 %v236_v54, %v235_v53 }
  0x12   : > { %333 = vmatprep.mubr.f32.mxu0 %v178_v25  ;;  %664 = vmatprep.subr.bf16.mxu0 %v663_v20  ;;  %v195_v56 = vld [vmem:[%s800_s21 + $0x90] sm:$0xff]  ;;  %v181_v57 = vld [vmem:[%s800_s21 + $0x20] sm:$0xff]  ;;  %v180_v60 = vld [vmem:[%s800_s21 + $0x18] sm:$0xff] }
  0x13   : > { %694 = vmatprep.subr.bf16.mxu1 %v663_v20  ;;  %363 = vmatprep.mubr.f32.mxu1 %v196_v26  ;;  %v199_v59 = vld [vmem:[%s800_s21 + $0xb0] sm:$0xff]  ;;  %v198_v61 = vld [vmem:[%s800_s21 + $0xa8] sm:$0xff]  ;;  %v184_v62 = vld [vmem:[%s800_s21 + $0x38] sm:$0xff] }
  0x14   : > { %v179_v63 = vld [vmem:[%s800_s21 + $0x10] sm:$0xff]  ;;  %v182_v1 = vld [vmem:[%s800_s21 + $0x28] sm:$0xff]  ;;  %v185_v3 = vld [vmem:[%s800_s21 + $0x40] sm:$0xff] }
  0x15   : > { %666 = vmatpush3.bf16.msra.mxu0 %v665_v27  ;;  %702 = vmatpush3.bf16.msra.mxu1 %v665_v27  ;;  %v183_v0 = vld [vmem:[%s800_s21 + $0x30] sm:$0xff]  ;;  %v186_v4 = vld [vmem:[%s800_s21 + $0x48] sm:$0xff]  ;;  %v188_v5 = vld [vmem:[%s800_s21 + $0x58] sm:$0xff] }
  0x16   : > { %668 = vmatprep.subr.bf16.mxu0 %v667_v28  ;;  %695 = vmatprep.subr.bf16.mxu1 %v667_v28  ;;  %v187_v2 = vld [vmem:[%s800_s21 + $0x50] sm:$0xff]  ;;  %v190_v6 = vld [vmem:[%s800_s21 + $0x68] sm:$0xff]  ;;  %v189_v8 = vld [vmem:[%s800_s21 + $0x60] sm:$0xff] }
  0x17   : > { %v191_v7 = vld [vmem:[%s800_s21 + $0x70] sm:$0xff]  ;;  %v194_v9 = vld [vmem:[%s800_s21 + $0x88] sm:$0xff]  ;;  %v193_v10 = vld [vmem:[%s800_s21 + $0x80] sm:$0xff] }
  0x18   : > { %v197_v11 = vld [vmem:[%s800_s21 + $0xa0] sm:$0xff]  ;;  %v192_v12 = vld [vmem:[%s800_s21 + $0x78] sm:$0xff] }
  0x19   : > { %670 = vmatpush3.bf16.msra.mxu0 %v669_v33  ;;  %703 = vmatpush3.bf16.msra.mxu1 %v669_v33  ;;  %v200_v13 = vld [vmem:[%s800_s21 + $0xb8] sm:$0xff]  ;;  %v552_v24 = vld [vmem:[%s922_s2] ss:$0 sm:$0xff]  ;;  %s551_s21 = sshll.u32 %s925_s20, 3 }
  0x1a   : > { %672 = vmatprep.subr.bf16.mxu0 %v671_v34  ;;  %696 = vmatprep.subr.bf16.mxu1 %v671_v34  ;;  %s907_s22 = scalar_lea.vmem %s923_s3, %s551_s21 }
  0x1d   : > { %674 = vmatpush3.bf16.msra.mxu0 %v673_v39  ;;  %704 = vmatpush3.bf16.msra.mxu1 %v673_v39 }
  0x1e   : > { %676 = vmatprep.subr.bf16.mxu0 %v675_v40  ;;  %697 = vmatprep.subr.bf16.mxu1 %v675_v40 }
  0x21   : > { %678 = vmatpush3.bf16.msra.mxu0 %v677_v45  ;;  %705 = vmatpush3.bf16.msra.mxu1 %v677_v45 }
  0x22   : > { %680 = vmatprep.subr.bf16.mxu0 %v679_v46  ;;  %698 = vmatprep.subr.bf16.mxu1 %v679_v46 }
  0x25   : > { %682 = vmatpush3.bf16.msra.mxu0 %v681_v51  ;;  %706 = vmatpush3.bf16.msra.mxu1 %v681_v51 }
  0x26   : > { %684 = vmatprep.subr.bf16.mxu1 %v683_v52 }
  0x28   : > { %334 = vmatmul.mubr.f32.vlgmr.msra.gmra.mrb[0].mxu0 %v177_v55  ;;  %364 = vmatmul.mubr.f32.vlgmr.msra.gmra.mrb[0].mxu1 %v195_v56 }
  0x29   : > { %686 = vmatpush3.bf16.msra.mxu1 %v683_v52  ;;  %338 = vmatprep.mubr.f32.mxu0 %v181_v57 }
  0x2a   : > { %368 = vmatprep.mubr.f32.mxu1 %v199_v59  ;;  %688 = vmatprep.subr.bf16.mxu1 %v687_v58 }
  0x2c   : > { %339 = vmatmul.mubr.f32.gmra.mrb[2].mxu0 %v180_v60  ;;  %369 = vmatmul.mubr.f32.gmra.mrb[2].mxu1 %v198_v61 }
  0x2d   : > { %690 = vmatpush3.bf16.msra.mxu1 %v687_v58  ;;  %343 = vmatprep.mubr.f32.mxu0 %v184_v62 }
  0x2e   : > { %639 = vmatprep.mubr.msk.f32.mxu1 %vm244_vm0, %v179_v63 }
  0x30   : > { %344 = vmatmul.mubr.f32.gmra.mrb[4].mxu0 %v183_v0  ;;  %640 = vmatmul.mubr.msk.f32.vlgmr.msra.gmra.mrb[4].mxu1 %vm244_vm0, %v182_v1 }
  0x31   : > { %348 = vmatprep.mubr.f32.mxu0 %v187_v2  ;;  %642 = vmatprep.mubr.msk.f32.mxu1 %vm244_vm0, %v185_v3 }
  0x34   : > { %349 = vmatmul.mubr.f32.gmra.mrb[6].mxu0 %v186_v4  ;;  %643 = vmatmul.mubr.msk.f32.gmra.mrb[6].mxu1 %vm244_vm0, %v188_v5 }
  0x35   : > { %353 = vmatprep.mubr.f32.mxu0 %v190_v6  ;;  %645 = vmatprep.mubr.msk.f32.mxu1 %vm244_vm0, %v191_v7 }
  0x38   : > { %354 = vmatmul.mubr.f32.gmra.mrb[8].mxu0 %v189_v8  ;;  %646 = vmatmul.mubr.msk.f32.gmra.mrb[8].mxu1 %vm244_vm0, %v194_v9 }
  0x39   : > { %358 = vmatprep.mubr.f32.mxu0 %v193_v10  ;;  %648 = vmatprep.mubr.msk.f32.mxu1 %vm244_vm0, %v197_v11 }
  0x3c   : > { %359 = vmatmul.mubr.f32.gmra.mrb[10].mxu0 %v192_v12  ;;  %649 = vmatmul.mubr.msk.f32.gmra.mrb[10].mxu1 %vm244_vm0, %v200_v13 }
  0xfb   : > { %v595_v14 = vpop.f32.mrb[0].mxu0  ;;  %v613_v15 = vpop.f32.mrb[0].mxu1 }
  0xfc   : > { %v596_v16 = vpop.f32.mrb[1].mxu0  ;;  %v614_v17 = vpop.f32.mrb[1].mxu1 }
  0xfd   : > { %v597_v18 = vadd.f32 %v596_v16, %v595_v14  ;;  %v615_v19 = vadd.f32 %v614_v17, %v613_v15 }
  0xff   : > { %v598_v20 = vpop.f32.mrb[2].mxu0  ;;  %v616_v21 = vpop.f32.mrb[2].mxu1  ;;  %v336_v30 = vadd.f32 %v597_v18, %v552_v24  ;;  %v366_v54 = vadd.f32 %v615_v19, %v552_v24 }
 0x100   : > { %v599_v22 = vpop.f32.mrb[3].mxu0  ;;  %v617_v23 = vpop.f32.mrb[3].mxu1 }
 0x101   : > { %v600_v25 = vadd.f32 %v599_v22, %v598_v20  ;;  %v618_v26 = vadd.f32 %v617_v23, %v616_v21 }
 0x103   : > { %v601_v27 = vpop.f32.mrb[4].mxu0  ;;  %v341_v28 = vadd.f32 %v600_v25, %v552_v24  ;;  %v641_v29 = vpop.f32.mrb[4].mxu1  ;;  %v371_v50 = vadd.f32 %v618_v26, %v552_v24 }
 0x104   : > { %v602_v31 = vpop.f32.mrb[5].mxu0  ;;  %v440_v32 = vpop.f32.mrb[5].mxu1 }
 0x105   : > { %v446_v33 = vadd.f32 %v641_v29, %v341_v28  ;;  %v603_v34 = vadd.f32 %v602_v31, %v601_v27  ;;  %v441_v35 = vadd.f32 %v440_v32, %v336_v30 }
 0x107   : > { %480 = vst [vmem:[%s907_s22 + $0x8] sm:$0xff] %v446_v33  ;;  %479 = vst [vmem:[%s907_s22] sm:$0xff] %v441_v35  ;;  %v604_v36 = vpop.f32.mrb[6].mxu0  ;;  %v644_v37 = vpop.f32.mrb[6].mxu1  ;;  %v346_v38 = vadd.f32 %v603_v34, %v552_v24 }
 0x108   : > { %v605_v39 = vpop.f32.mrb[7].mxu0  ;;  %v450_v40 = vpop.f32.mrb[7].mxu1 }
 0x109   : > { %v606_v41 = vadd.f32 %v605_v39, %v604_v36  ;;  %v451_v42 = vadd.f32 %v450_v40, %v346_v38 }
 0x10b   : > { %v351_v43 = vadd.f32 %v606_v41, %v552_v24  ;;  %481 = vst [vmem:[%s907_s22 + $0x10] sm:$0xff] %v451_v42  ;;  %v607_v44 = vpop.f32.mrb[8].mxu0  ;;  %v647_v45 = vpop.f32.mrb[8].mxu1 }
 0x10c   : > { %v608_v46 = vpop.f32.mrb[9].mxu0  ;;  %v460_v47 = vpop.f32.mrb[9].mxu1 }
 0x10d   : > { %v456_v48 = vadd.f32 %v644_v37, %v351_v43  ;;  %v609_v49 = vadd.f32 %v608_v46, %v607_v44 }
 0x10f   : > { %482 = vst [vmem:[%s907_s22 + $0x18] sm:$0xff] %v456_v48  ;;  %v356_v51 = vadd.f32 %v609_v49, %v552_v24  ;;  %v610_v52 = vpop.f32.mrb[10].mxu0  ;;  %v650_v53 = vpop.f32.mrb[10].mxu1 }
 0x110   : > { %v476_v55 = vadd.f32 %v650_v53, %v371_v50  ;;  %v611_v56 = vpop.f32.mrb[11].mxu0  ;;  %v470_v57 = vpop.f32.mrb[11].mxu1 }
 0x111   : > { %v461_v58 = vadd.f32 %v460_v47, %v356_v51  ;;  %v612_v59 = vadd.f32 %v611_v56, %v610_v52  ;;  %v471_v60 = vadd.f32 %v470_v57, %v366_v54 }
 0x112   : > { %486 = vst [vmem:[%s907_s22 + $0x38] sm:$0xff] %v476_v55 }
 0x113   : > { %483 = vst [vmem:[%s907_s22 + $0x20] sm:$0xff] %v461_v58  ;;  %v361_v61 = vadd.f32 %v612_v59, %v552_v24  ;;  %485 = vst [vmem:[%s907_s22 + $0x30] sm:$0xff] %v471_v60 }
 0x115   : > { %v466_v62 = vadd.f32 %v647_v45, %v361_v61 }
 0x117   : > { %484 = vst [vmem:[%s907_s22 + $0x28] sm:$0xff] %v466_v62 }
 0x118 PF: > { %s13_s12 = sadd.s32 1, %s722_s12  }
 0x119   : > { %p10_p4 = scmp.ge.s32.totalorder %s13_s12, 4  }
 0x11b   :  { %12 = sbr.rel (!%p10_p4) target bundleno = 1 (0x1), region = 62 }

</bundles_post_ra>
